<compile_context>
chip_gen: v7x
topology: tpu7x:2x2x1
jax: 0.10.0
libtpu: 0.0.40
codegen_flags: <defaults>
</compile_context>

<pallas_src>
import functools

import jax
import jax.numpy as jnp
from jax.experimental import pallas as pl
from jax.experimental.pallas import tpu as pltpu

_VMEM_LIMIT = 32 * 1024 * 1024   # explicit scoped-VMEM budget; safe on v5e/v6e/v7x


# ---------------------------------------------------------------------------
# helpers
# ---------------------------------------------------------------------------
def _round_up(x, m):
    return (x + m - 1) // m * m


def _row_tiling(n_rows, row_tile=512):
    """Sublane-aligned row tile; guarantees >=2 grid steps when possible so both
    v7x TensorCores get work on the 'parallel' axis. Returns (tile, padded_rows)."""
    r8 = _round_up(max(n_rows, 8), 8)
    tr = min(row_tile, r8)
    rp = _round_up(r8, tr)
    if rp // tr < 2 and r8 > 8:
        tr = _round_up(-(-r8 // 2), 8)
        rp = _round_up(r8, tr)
    return tr, rp


def _pad2d(a, rows, cols):
    r, c = a.shape
    return jnp.pad(a, ((0, rows - r), (0, cols - c)))


def _im2col_nhwc(x, k, stride, pad):
    """x: [N, H, W, C] -> patches [N*OH*OW, k*k*C]; column order (kh, kw, c)."""
    N, H, W, C = x.shape
    if pad > 0:
        x = jnp.pad(x, ((0, 0), (pad, pad), (pad, pad), (0, 0)))
    Hp, Wp = H + 2 * pad, W + 2 * pad
    OH = (Hp - k) // stride + 1
    OW = (Wp - k) // stride + 1
    cols = [x[:, kh:kh + stride * OH:stride, kw:kw + stride * OW:stride, :]
            for kh in range(k) for kw in range(k)]
    cols = jnp.stack(cols, axis=3)                     # [N, OH, OW, k*k, C]
    return cols.reshape(N * OH * OW, k * k * C), (N, OH, OW)


# ---------------------------------------------------------------------------
# Pallas kernels (f32 compute, bf16 storage where the consumer is bf16 anyway)
# ---------------------------------------------------------------------------
def _conv_lrelu_kernel(p_ref, w_ref, b_ref, o_ref, *, slope):
    """im2col conv tile: bf16 matmul (f32 accum) + bias + leaky_relu, bf16 store."""
    acc = jnp.dot(p_ref[...], w_ref[...], preferred_element_type=jnp.float32)
    acc = acc + b_ref[...]
    o_ref[...] = jnp.where(acc >= 0.0, acc, slope * acc).astype(o_ref.dtype)


def _conv_stats_kernel(p_ref, w_ref, b_ref, o_ref, st_ref, *, n_valid, row_tile):
    """im2col conv tile + per-tile per-channel (sum, sum-of-squares) for BatchNorm."""
    acc = jnp.dot(p_ref[...], w_ref[...], preferred_element_type=jnp.float32)
    acc = acc + b_ref[...]
    o_ref[...] = acc
    rows = row_tile * pl.program_id(0) + jax.lax.broadcasted_iota(
        jnp.int32, (row_tile, 1), 0)
    m = (rows < n_valid).astype(jnp.float32)           # mask padded rows
    am = acc * m
    s1 = jnp.sum(am, axis=0, keepdims=True)            # per-channel sum
    s2 = jnp.sum(am * acc, axis=0, keepdims=True)      # per-channel sumsq
    oc = acc.shape[1]
    st_ref[...] = jnp.concatenate(
        [s1, s2, jnp.zeros((6, oc), jnp.float32)], axis=0)[None]


def _bn_lrelu_kernel(x_ref, sc_ref, sh_ref, o_ref, *, slope):
    """Affine BatchNorm (precomputed scale/shift) + leaky_relu (f32 math, bf16 store)."""
    t = x_ref[...] * sc_ref[...] + sh_ref[...]
    o_ref[...] = jnp.where(t >= 0.0, t, slope * t).astype(o_ref.dtype)


def _tail_kernel(p_ref, w_ref, b_ref, o_ref, acc_ref, *, n_valid, row_tile):
    """conv3 as MXU dot against a [K3p,128] column weight + sigmoid + masked
    per-sample running sum; mean written on the last spatial tile."""
    s = pl.program_id(1)

    @pl.when(s == 0)
    def _():
        acc_ref[...] = jnp.zeros_like(acc_ref)

    logits = jnp.dot(p_ref[...], w_ref[...], preferred_element_type=jnp.float32)
    logits = logits + b_ref[...]                       # only lane 0 is meaningful
    rows = row_tile * s + jax.lax.broadcasted_iota(jnp.int32, (row_tile, 1), 0)
    m = (rows < n_valid).astype(jnp.float32)           # mask padded spatial rows
    acc_ref[...] += jnp.sum(jax.nn.sigmoid(logits) * m, axis=0, keepdims=True)

    @pl.when(s == pl.num_programs(1) - 1)
    def _():
        mean = acc_ref[...] * (1.0 / n_valid)          # [1, 128]
        o_ref[...] = jnp.broadcast_to(mean[None], (1, 8, 128))


# ---------------------------------------------------------------------------
# pallas_call wrappers
# ---------------------------------------------------------------------------
def _conv_lrelu(patches, w, b, *, slope=0.2, row_tile=512):
    R, _ = patches.shape
    Kp, OCp = w.shape
    tr, Rp = _row_tiling(R, row_tile)
    p = _pad2d(patches, Rp, Kp).astype(jnp.bfloat16)   # no-op cast: patches already bf16
    out = pl.pallas_call(
        functools.partial(_conv_lrelu_kernel, slope=slope),
        out_shape=jax.ShapeDtypeStruct((Rp, OCp), jnp.bfloat16),
        grid=(Rp // tr,),
        in_specs=[pl.BlockSpec((tr, Kp), lambda i: (i, 0)),
                  pl.BlockSpec((Kp, OCp), lambda i: (0, 0)),
                  pl.BlockSpec((1, OCp), lambda i: (0, 0))],
        out_specs=pl.BlockSpec((tr, OCp), lambda i: (i, 0)),
        compiler_params=pltpu.CompilerParams(
            dimension_semantics=("parallel",),
            vmem_limit_bytes=_VMEM_LIMIT),
    )(p, w, b)
    return out                                          # row/lane padded; caller slices once


def _conv_stats(patches, w, b, *, row_tile=512):
    R, _ = patches.shape
    Kp, OCp = w.shape
    tr, Rp = _row_tiling(R, row_tile)
    nt = Rp // tr
    p = _pad2d(patches, Rp, Kp).astype(jnp.bfloat16)
    out, stats = pl.pallas_call(
        functools.partial(_conv_stats_kernel, n_valid=R, row_tile=tr),
        out_shape=(jax.ShapeDtypeStruct((Rp, OCp), jnp.float32),
                   jax.ShapeDtypeStruct((nt, 8, OCp), jnp.float32)),
        grid=(nt,),
        in_specs=[pl.BlockSpec((tr, Kp), lambda i: (i, 0)),
                  pl.BlockSpec((Kp, OCp), lambda i: (0, 0)),
                  pl.BlockSpec((1, OCp), lambda i: (0, 0))],
        out_specs=(pl.BlockSpec((tr, OCp), lambda i: (i, 0)),
                   pl.BlockSpec((1, 8, OCp), lambda i: (i, 0, 0))),
        compiler_params=pltpu.CompilerParams(
            dimension_semantics=("parallel",),
            vmem_limit_bytes=_VMEM_LIMIT),
    )(p, w, b)
    s = jnp.sum(stats, axis=0)                          # [8, OCp]; rows 0/1 = sum / sumsq
    return out, s[0], s[1]                              # out stays row-padded (fed to BN as-is)


def _bn_lrelu_apply(x_padded, scale, shift, n_rows, *, slope=0.2, row_tile=512):
    Rp, C = x_padded.shape                              # already row/lane padded
    tr, rp = _row_tiling(n_rows, row_tile)
    assert rp == Rp                                     # same deterministic tiling as _conv_stats
    out = pl.pallas_call(
        functools.partial(_bn_lrelu_kernel, slope=slope),
        out_shape=jax.ShapeDtypeStruct((Rp, C), jnp.bfloat16),
        grid=(Rp // tr,),
        in_specs=[pl.BlockSpec((tr, C), lambda i: (i, 0)),
                  pl.BlockSpec((1, C), lambda i: (0, 0)),
                  pl.BlockSpec((1, C), lambda i: (0, 0))],
        out_specs=pl.BlockSpec((tr, C), lambda i: (i, 0)),
        compiler_params=pltpu.CompilerParams(
            dimension_semantics=("parallel",),
            vmem_limit_bytes=_VMEM_LIMIT),
    )(x_padded, scale.reshape(1, C), shift.reshape(1, C))
    return out                                          # padded; caller slices once


def _tail(p3, w3, b3, *, row_tile=512):
    """p3: [N, S3, K3] bf16 patches ; w3: [K3p, 128] bf16 (col 0 live) ; b3: [1,128] f32."""
    N, S3, K3 = p3.shape
    K3p = w3.shape[0]
    tr = min(row_tile, _round_up(S3, 8))
    S3p = _round_up(S3, tr)
    nst = S3p // tr
    p3 = jnp.pad(p3, ((0, 0), (0, S3p - S3), (0, K3p - K3))).reshape(N * S3p, K3p)
    out = pl.pallas_call(
        functools.partial(_tail_kernel, n_valid=S3, row_tile=tr),
        out_shape=jax.ShapeDtypeStruct((N, 8, 128), jnp.float32),
        grid=(N, nst),
        in_specs=[pl.BlockSpec((tr, K3p), lambda n, s: (n * nst + s, 0)),
                  pl.BlockSpec((K3p, 128), lambda n, s: (0, 0)),
                  pl.BlockSpec((1, 128), lambda n, s: (0, 0))],
        out_specs=pl.BlockSpec((1, 8, 128), lambda n, s: (n, 0, 0)),
        scratch_shapes=[pltpu.VMEM((1, 128), jnp.float32)],
        compiler_params=pltpu.CompilerParams(
            dimension_semantics=("parallel", "arbitrary"),
            vmem_limit_bytes=_VMEM_LIMIT),
    )(p3, w3, b3)
    return out[:, 0, 0]                                 # lane/sublane 0 holds the answer


# ---------------------------------------------------------------------------
# Parameters: PyTorch-layout init (normal_init(0, 0.02)), then one-time
# conversion into matmul-ready, lane-padded, bf16 layouts.
# ---------------------------------------------------------------------------
def init_raw_params(key, c, d, std=0.02):
    ks = jax.random.split(key, 4)

    def w(k, oc, ic, kh, kw):
        return std * jax.random.normal(k, (oc, ic, kh, kw), jnp.float32)

    return dict(
        w1_1=w(ks[0], d // 2, 1, 4, 4), b1_1=jnp.zeros((d // 2,), jnp.float32),
        w1_2=w(ks[1], d // 2, c, 4, 4), b1_2=jnp.zeros((d // 2,), jnp.float32),
        w2=w(ks[2], d * 2, d, 4, 4),    b2=jnp.zeros((d * 2,), jnp.float32),
        g2=jnp.ones((d * 2,), jnp.float32), be2=jnp.zeros((d * 2,), jnp.float32),
        w3=w(ks[3], 1, d * 2, 4, 4),    b3=jnp.zeros((1,), jnp.float32),
    )


def prepare_params(raw, c, d):
    IC1 = 1 + c

    # conv1_1 / conv1_2 / concat fused as one block-diagonal weight.
    w11 = jnp.transpose(raw["w1_1"], (2, 3, 1, 0))      # [4,4,1,d//2]
    w12 = jnp.transpose(raw["w1_2"], (2, 3, 1, 0))      # [4,4,c,d//2]
    Wc = jnp.zeros((4, 4, IC1, d), jnp.float32)
    Wc = Wc.at[:, :, :1, :d // 2].set(w11)
    Wc = Wc.at[:, :, 1:, d // 2:].set(w12)
    W1 = Wc.reshape(16 * IC1, d)
    b1 = jnp.concatenate([raw["b1_1"], raw["b1_2"]])

    W2 = jnp.transpose(raw["w2"], (2, 3, 1, 0)).reshape(16 * d, 2 * d)

    def padw(W):                                        # K x OC -> 128-padded, bf16
        K, OC = W.shape
        return jnp.pad(W, ((0, _round_up(K, 128) - K),
                           (0, _round_up(OC, 128) - OC))).astype(jnp.bfloat16)

    def padv(v):                                        # OC vector -> [1, OCp] f32
        n = v.shape[0]
        return jnp.pad(v, (0, _round_up(n, 128) - n)).reshape(1, -1).astype(jnp.float32)

    OC2p = _round_up(2 * d, 128)
    K3 = 16 * 2 * d
    K3p = _round_up(K3, 128)
    w3_flat = jnp.transpose(raw["w3"], (2, 3, 1, 0)).reshape(K3)
    w3_col = jnp.zeros((K3p, 128), jnp.float32).at[:K3, 0].set(w3_flat)   # MXU column weight
    return dict(
        c=c, d=d,
        w1=padw(W1), b1=padv(b1),
        w2=padw(W2), b2=padv(raw["b2"]),
        g2=jnp.pad(raw["g2"], (0, OC2p - 2 * d)),       # zero-pad -> padded lanes stay 0
        be2=jnp.pad(raw["be2"], (0, OC2p - 2 * d)),
        w3=w3_col.astype(jnp.bfloat16),
        b3=jnp.tile(raw["b3"].reshape(1, 1), (1, 128)).astype(jnp.float32),
    )


# ---------------------------------------------------------------------------
# Forward pass (mirrors CPatchDiscriminator.forward(input, label))
# ---------------------------------------------------------------------------
def cpatch_discriminator(params, inp, label, *, slope=0.2, eps=1e-5):
    d = params["d"]

    # One NCHW->NHWC transpose + bf16 cast at entry; channel-last bf16 from here on.
    x = jnp.transpose(jnp.concatenate([inp, label], axis=1),
                      (0, 2, 3, 1)).astype(jnp.bfloat16)

    # layer 1: conv1_1(input) ++ conv1_2(label) + leaky_relu  (fused, block-diag weight)
    p1, (N, OH1, OW1) = _im2col_nhwc(x, 4, 2, 1)
    R1 = N * OH1 * OW1
    h1 = _conv_lrelu(p1, params["w1"], params["b1"], slope=slope)
    h1 = h1[:R1, :d].reshape(N, OH1, OW1, d)            # bf16

    # layer 2: conv2 -> global batch stats -> BN -> leaky_relu
    p2, (_, OH2, OW2) = _im2col_nhwc(h1, 4, 2, 1)
    R2 = N * OH2 * OW2
    h2p, s1, s2 = _conv_stats(p2, params["w2"], params["b2"])   # row-padded f32 + stats
    mean = s1 / R2
    var = jnp.maximum(s2 / R2 - mean * mean, 0.0)       # biased var (train-mode BN)
    scale = params["g2"] * jax.lax.rsqrt(var + eps)
    shift = params["be2"] - mean * scale
    h2 = _bn_lrelu_apply(h2p, scale, shift, R2, slope=slope)    # padded bf16
    h2 = h2[:R2, :2 * d].reshape(N, OH2, OW2, 2 * d)    # single slice after BN

    # layer 3 tail: conv3 (MXU) + sigmoid + per-sample spatial mean (blocked kernel)
    p3, (_, OH3, OW3) = _im2col_nhwc(h2, 4, 2, 1)       # bf16 patches
    p3 = p3.reshape(N, OH3 * OW3, p3.shape[1])
    return _tail(p3, params["w3"], params["b3"])        # [N], in (0, 1)


if __name__ == "__main__":
    c, d = 6, 32                                        # channel set to 6; small d (module default 128)
    N, H, W = 2, 32, 32
    key = jax.random.PRNGKey(0)
    k_in, k_lb, k_p = jax.random.split(key, 3)
    inp = jax.random.normal(k_in, (N, 1, H, W), jnp.float32)
    label = jax.random.normal(k_lb, (N, c, H, W), jnp.float32)

    raw = init_raw_params(k_p, c, d)
    params = prepare_params(raw, c, d)                  # weight re-layout hoisted out of the fwd path

    fwd = jax.jit(functools.partial(cpatch_discriminator, params))
    out = fwd(inp, label)
    jax.block_until_ready(out)

    assert out.shape == (N,)
    assert bool(jnp.all(jnp.isfinite(out)))
    assert bool(jnp.all((out >= 0.0) & (out <= 1.0)))
    print("KERNEL_OK")
</pallas_src>

<mosaic_0001>
module attributes {stable_mosaic.version = 11 : i64} {
  func.func @_conv_lrelu_kernel(%arg0: i32, %arg1: memref<256x128xbf16, #tpu.memory_space<vmem>>, %arg2: memref<128x128xbf16, #tpu.memory_space<vmem>>, %arg3: memref<1x128xf32, #tpu.memory_space<vmem>>, %arg4: memref<256x128xbf16, #tpu.memory_space<vmem>>) attributes {dimension_semantics = [#tpu.dimension_semantics<parallel>], iteration_bounds = array<i64: 2>, scalar_prefetch = 0 : i64, scratch_operands = 0 : i64, tpu.core_type = #tpu.core_type<tc>, window_params = [{transform_indices = @transform_0, window_bounds = array<i64: 256, 128>}, {pipeline_mode = #tpu.pipeline_mode<synchronous>, transform_indices = @transform_1, window_bounds = array<i64: 128, 128>}, {pipeline_mode = #tpu.pipeline_mode<synchronous>, transform_indices = @transform_2, window_bounds = array<i64: 1, 128>}, {transform_indices = @transform_3, window_bounds = array<i64: 256, 128>}]} {
    %c0 = arith.constant 0 : index
    %c0_0 = arith.constant 0 : index
    %0 = vector.load %arg1[%c0, %c0_0] : memref<256x128xbf16, #tpu.memory_space<vmem>>, vector<256x128xbf16>
    %c0_1 = arith.constant 0 : index
    %c0_2 = arith.constant 0 : index
    %1 = vector.load %arg2[%c0_1, %c0_2] : memref<128x128xbf16, #tpu.memory_space<vmem>>, vector<128x128xbf16>
    %cst = arith.constant dense<0.000000e+00> : vector<256x128xf32>
    %2 = tpu.matmul %0, %1, %cst {dimension_numbers = #tpu.dot_dimension_numbers<[1], [0], [0], [1], [0, 0, 1, 1], [], []>} : vector<256x128xbf16>, vector<128x128xbf16>, vector<256x128xf32> -> vector<256x128xf32>
    %c0_3 = arith.constant 0 : index
    %c0_4 = arith.constant 0 : index
    %3 = vector.load %arg3[%c0_3, %c0_4] : memref<1x128xf32, #tpu.memory_space<vmem>>, vector<1x128xf32>
    %4 = vector.broadcast %3 : vector<1x128xf32> to vector<256x128xf32>
    %5 = arith.addf %2, %4 : vector<256x128xf32>
    %cst_5 = arith.constant 0.000000e+00 : f32
    %6 = vector.broadcast %cst_5 : f32 to vector<256x128xf32>
    %7 = arith.cmpf oge, %5, %6 : vector<256x128xf32>
    %cst_6 = arith.constant 2.000000e-01 : f32
    %8 = vector.broadcast %cst_6 : f32 to vector<256x128xf32>
    %9 = arith.mulf %8, %5 : vector<256x128xf32>
    %10 = arith.select %7, %5, %9 : vector<256x128xi1>, vector<256x128xf32>
    %11 = arith.truncf %10 : vector<256x128xf32> to vector<256x128xbf16>
    %c0_7 = arith.constant 0 : index
    %c0_8 = arith.constant 0 : index
    %12 = vector.load %arg4[%c0_7, %c0_8] : memref<256x128xbf16, #tpu.memory_space<vmem>>, vector<256x128xbf16>
    tpu.vector_store %arg4[%c0_7, %c0_8], %11 {strides = array<i32>} : memref<256x128xbf16, #tpu.memory_space<vmem>>, vector<256x128xbf16>,
    return
  }
  func.func @transform_0(%arg0: i32) -> (i32, i32) {
    %c0_i32 = arith.constant 0 : i32
    %c0_i32_0 = arith.constant 0 : i32
    return %arg0, %c0_i32 : i32, i32
  }
  func.func @transform_1(%arg0: i32) -> (i32, i32) {
    %c0_i32 = arith.constant 0 : i32
    %c0_i32_0 = arith.constant 0 : i32
    %c0_i32_1 = arith.constant 0 : i32
    return %c0_i32, %c0_i32_0 : i32, i32
  }
  func.func @transform_2(%arg0: i32) -> (i32, i32) {
    %c0_i32 = arith.constant 0 : i32
    %c0_i32_0 = arith.constant 0 : i32
    %c0_i32_1 = arith.constant 0 : i32
    return %c0_i32, %c0_i32_0 : i32, i32
  }
  func.func @transform_3(%arg0: i32) -> (i32, i32) {
    %c0_i32 = arith.constant 0 : i32
    %c0_i32_0 = arith.constant 0 : i32
    return %arg0, %c0_i32 : i32, i32
  }
}

module attributes {stable_mosaic.version = 11 : i64} {
  func.func @_conv_stats_kernel(%arg0: i32, %arg1: memref<64x512xbf16, #tpu.memory_space<vmem>>, %arg2: memref<512x128xbf16, #tpu.memory_space<vmem>>, %arg3: memref<1x128xf32, #tpu.memory_space<vmem>>, %arg4: memref<64x128xf32, #tpu.memory_space<vmem>>, %arg5: memref<1x8x128xf32, #tpu.memory_space<vmem>>) attributes {dimension_semantics = [#tpu.dimension_semantics<parallel>], iteration_bounds = array<i64: 2>, scalar_prefetch = 0 : i64, scratch_operands = 0 : i64, tpu.core_type = #tpu.core_type<tc>, window_params = [{transform_indices = @transform_0, window_bounds = array<i64: 64, 512>}, {pipeline_mode = #tpu.pipeline_mode<synchronous>, transform_indices = @transform_1, window_bounds = array<i64: 512, 128>}, {pipeline_mode = #tpu.pipeline_mode<synchronous>, transform_indices = @transform_2, window_bounds = array<i64: 1, 128>}, {transform_indices = @transform_3, window_bounds = array<i64: 64, 128>}, {transform_indices = @transform_4, window_bounds = array<i64: 1, 8, 128>}]} {
    %c0 = arith.constant 0 : index
    %c0_0 = arith.constant 0 : index
    %0 = vector.load %arg1[%c0, %c0_0] : memref<64x512xbf16, #tpu.memory_space<vmem>>, vector<64x512xbf16>
    %c0_1 = arith.constant 0 : index
    %c0_2 = arith.constant 0 : index
    %1 = vector.load %arg2[%c0_1, %c0_2] : memref<512x128xbf16, #tpu.memory_space<vmem>>, vector<512x128xbf16>
    %cst = arith.constant dense<0.000000e+00> : vector<64x128xf32>
    %2 = tpu.matmul %0, %1, %cst {dimension_numbers = #tpu.dot_dimension_numbers<[1], [0], [0], [1], [0, 0, 1, 1], [], []>} : vector<64x512xbf16>, vector<512x128xbf16>, vector<64x128xf32> -> vector<64x128xf32>
    %c0_3 = arith.constant 0 : index
    %c0_4 = arith.constant 0 : index
    %3 = vector.load %arg3[%c0_3, %c0_4] : memref<1x128xf32, #tpu.memory_space<vmem>>, vector<1x128xf32>
    %4 = vector.broadcast %3 : vector<1x128xf32> to vector<64x128xf32>
    %5 = arith.addf %2, %4 : vector<64x128xf32>
    %c0_5 = arith.constant 0 : index
    %c0_6 = arith.constant 0 : index
    %6 = vector.load %arg4[%c0_5, %c0_6] : memref<64x128xf32, #tpu.memory_space<vmem>>, vector<64x128xf32>
    tpu.vector_store %arg4[%c0_5, %c0_6], %5 {strides = array<i32>} : memref<64x128xf32, #tpu.memory_space<vmem>>, vector<64x128xf32>,
    %c64_i32 = arith.constant 64 : i32
    %7 = arith.muli %c64_i32, %arg0 : i32
    %8 = tpu.iota {dimensions = array<i32: 0>} : vector<64x1xi32>
    %9 = vector.broadcast %7 : i32 to vector<64x1xi32>
    %10 = arith.addi %9, %8 : vector<64x1xi32>
    %c128_i32 = arith.constant 128 : i32
    %11 = vector.broadcast %c128_i32 : i32 to vector<64x1xi32>
    %12 = arith.cmpi slt, %10, %11 : vector<64x1xi32>
    %13 = arith.extui %12 : vector<64x1xi1> to vector<64x1xi32>
    %14 = arith.sitofp %13 : vector<64x1xi32> to vector<64x1xf32>
    %15 = vector.broadcast %14 : vector<64x1xf32> to vector<64x128xf32>
    %16 = arith.mulf %5, %15 : vector<64x128xf32>
    %cst_7 = arith.constant dense<0.000000e+00> : vector<128xf32>
    %17 = vector.multi_reduction <add>, %16, %cst_7 [0] : vector<64x128xf32> to vector<128xf32>
    %18 = vector.shape_cast %17 : vector<128xf32> to vector<1x128xf32>
    %19 = arith.mulf %16, %5 : vector<64x128xf32>
    %cst_8 = arith.constant dense<0.000000e+00> : vector<128xf32>
    %20 = vector.multi_reduction <add>, %19, %cst_8 [0] : vector<64x128xf32> to vector<128xf32>
    %21 = vector.shape_cast %20 : vector<128xf32> to vector<1x128xf32>
    %cst_9 = arith.constant 0.000000e+00 : f32
    %22 = vector.broadcast %cst_9 : f32 to vector<6x128xf32>
    %23 = tpu.concatenate %18, %21, %22 in 0 : vector<1x128xf32>, vector<1x128xf32>, vector<6x128xf32> -> vector<8x128xf32>
    %24 = vector.shape_cast %23 : vector<8x128xf32> to vector<1x8x128xf32>
    %c0_10 = arith.constant 0 : index
    %c0_11 = arith.constant 0 : index
    %c0_12 = arith.constant 0 : index
    %25 = vector.load %arg5[%c0_10, %c0_11, %c0_12] : memref<1x8x128xf32, #tpu.memory_space<vmem>>, vector<1x8x128xf32>
    tpu.vector_store %arg5[%c0_10, %c0_11, %c0_12], %24 {strides = array<i32>} : memref<1x8x128xf32, #tpu.memory_space<vmem>>, vector<1x8x128xf32>,
    return
  }
  func.func @transform_0(%arg0: i32) -> (i32, i32) {
    %c0_i32 = arith.constant 0 : i32
    %c0_i32_0 = arith.constant 0 : i32
    return %arg0, %c0_i32 : i32, i32
  }
  func.func @transform_1(%arg0: i32) -> (i32, i32) {
    %c0_i32 = arith.constant 0 : i32
    %c0_i32_0 = arith.constant 0 : i32
    %c0_i32_1 = arith.constant 0 : i32
    return %c0_i32, %c0_i32_0 : i32, i32
  }
  func.func @transform_2(%arg0: i32) -> (i32, i32) {
    %c0_i32 = arith.constant 0 : i32
    %c0_i32_0 = arith.constant 0 : i32
    %c0_i32_1 = arith.constant 0 : i32
    return %c0_i32, %c0_i32_0 : i32, i32
  }
  func.func @transform_3(%arg0: i32) -> (i32, i32) {
    %c0_i32 = arith.constant 0 : i32
    %c0_i32_0 = arith.constant 0 : i32
    return %arg0, %c0_i32 : i32, i32
  }
  func.func @transform_4(%arg0: i32) -> (i32, i32, i32) {
    %c0_i32 = arith.constant 0 : i32
    %c0_i32_0 = arith.constant 0 : i32
    %c0_i32_1 = arith.constant 0 : i32
    return %arg0, %c0_i32, %c0_i32_0 : i32, i32, i32
  }
}

module attributes {stable_mosaic.version = 11 : i64} {
  func.func @_bn_lrelu_kernel(%arg0: i32, %arg1: memref<64x128xf32, #tpu.memory_space<vmem>>, %arg2: memref<1x128xf32, #tpu.memory_space<vmem>>, %arg3: memref<1x128xf32, #tpu.memory_space<vmem>>, %arg4: memref<64x128xbf16, #tpu.memory_space<vmem>>) attributes {dimension_semantics = [#tpu.dimension_semantics<parallel>], iteration_bounds = array<i64: 2>, scalar_prefetch = 0 : i64, scratch_operands = 0 : i64, tpu.core_type = #tpu.core_type<tc>, window_params = [{transform_indices = @transform_0, window_bounds = array<i64: 64, 128>}, {pipeline_mode = #tpu.pipeline_mode<synchronous>, transform_indices = @transform_1, window_bounds = array<i64: 1, 128>}, {pipeline_mode = #tpu.pipeline_mode<synchronous>, transform_indices = @transform_2, window_bounds = array<i64: 1, 128>}, {transform_indices = @transform_3, window_bounds = array<i64: 64, 128>}]} {
    %c0 = arith.constant 0 : index
    %c0_0 = arith.constant 0 : index
    %0 = vector.load %arg1[%c0, %c0_0] : memref<64x128xf32, #tpu.memory_space<vmem>>, vector<64x128xf32>
    %c0_1 = arith.constant 0 : index
    %c0_2 = arith.constant 0 : index
    %1 = vector.load %arg2[%c0_1, %c0_2] : memref<1x128xf32, #tpu.memory_space<vmem>>, vector<1x128xf32>
    %2 = vector.broadcast %1 : vector<1x128xf32> to vector<64x128xf32>
    %3 = arith.mulf %0, %2 : vector<64x128xf32>
    %c0_3 = arith.constant 0 : index
    %c0_4 = arith.constant 0 : index
    %4 = vector.load %arg3[%c0_3, %c0_4] : memref<1x128xf32, #tpu.memory_space<vmem>>, vector<1x128xf32>
    %5 = vector.broadcast %4 : vector<1x128xf32> to vector<64x128xf32>
    %6 = arith.addf %3, %5 : vector<64x128xf32>
    %cst = arith.constant 0.000000e+00 : f32
    %7 = vector.broadcast %cst : f32 to vector<64x128xf32>
    %8 = arith.cmpf oge, %6, %7 : vector<64x128xf32>
    %cst_5 = arith.constant 2.000000e-01 : f32
    %9 = vector.broadcast %cst_5 : f32 to vector<64x128xf32>
    %10 = arith.mulf %9, %6 : vector<64x128xf32>
    %11 = arith.select %8, %6, %10 : vector<64x128xi1>, vector<64x128xf32>
    %12 = arith.truncf %11 : vector<64x128xf32> to vector<64x128xbf16>
    %c0_6 = arith.constant 0 : index
    %c0_7 = arith.constant 0 : index
    %13 = vector.load %arg4[%c0_6, %c0_7] : memref<64x128xbf16, #tpu.memory_space<vmem>>, vector<64x128xbf16>
    tpu.vector_store %arg4[%c0_6, %c0_7], %12 {strides = array<i32>} : memref<64x128xbf16, #tpu.memory_space<vmem>>, vector<64x128xbf16>,
    return
  }
  func.func @transform_0(%arg0: i32) -> (i32, i32) {
    %c0_i32 = arith.constant 0 : i32
    %c0_i32_0 = arith.constant 0 : i32
    return %arg0, %c0_i32 : i32, i32
  }
  func.func @transform_1(%arg0: i32) -> (i32, i32) {
    %c0_i32 = arith.constant 0 : i32
    %c0_i32_0 = arith.constant 0 : i32
    %c0_i32_1 = arith.constant 0 : i32
    return %c0_i32, %c0_i32_0 : i32, i32
  }
  func.func @transform_2(%arg0: i32) -> (i32, i32) {
    %c0_i32 = arith.constant 0 : i32
    %c0_i32_0 = arith.constant 0 : i32
    %c0_i32_1 = arith.constant 0 : i32
    return %c0_i32, %c0_i32_0 : i32, i32
  }
  func.func @transform_3(%arg0: i32) -> (i32, i32) {
    %c0_i32 = arith.constant 0 : i32
    %c0_i32_0 = arith.constant 0 : i32
    return %arg0, %c0_i32 : i32, i32
  }
}

module attributes {stable_mosaic.version = 11 : i64} {
  func.func @_tail_kernel(%arg0: i32, %arg1: i32, %arg2: memref<16x1024xbf16, #tpu.memory_space<vmem>>, %arg3: memref<1024x128xbf16, #tpu.memory_space<vmem>>, %arg4: memref<1x128xf32, #tpu.memory_space<vmem>>, %arg5: memref<1x8x128xf32, #tpu.memory_space<vmem>>, %arg6: memref<1x128xf32, #tpu.memory_space<vmem>>) attributes {dimension_semantics = [#tpu.dimension_semantics<parallel>, #tpu.dimension_semantics<arbitrary>], iteration_bounds = array<i64: 2, 1>, scalar_prefetch = 0 : i64, scratch_operands = 1 : i64, tpu.core_type = #tpu.core_type<tc>, window_params = [{transform_indices = @transform_0, window_bounds = array<i64: 16, 1024>}, {pipeline_mode = #tpu.pipeline_mode<synchronous>, transform_indices = @transform_1, window_bounds = array<i64: 1024, 128>}, {pipeline_mode = #tpu.pipeline_mode<synchronous>, transform_indices = @transform_2, window_bounds = array<i64: 1, 128>}, {transform_indices = @transform_3, window_bounds = array<i64: 1, 8, 128>}]} {
    %c0_i32 = arith.constant 0 : i32
    %0 = arith.cmpi eq, %arg1, %c0_i32 : i32
    %1 = arith.extui %0 : i1 to i32
    %c0_i32_0 = arith.constant 0 : i32
    %2 = arith.cmpi ne, %1, %c0_i32_0 : i32
    scf.if %2 {
      %cst_15 = arith.constant 0.000000e+00 : f32
      %32 = vector.broadcast %cst_15 : f32 to vector<1x128xf32>
      %c0_16 = arith.constant 0 : index
      %c0_17 = arith.constant 0 : index
      %33 = vector.load %arg6[%c0_16, %c0_17] : memref<1x128xf32, #tpu.memory_space<vmem>>, vector<1x128xf32>
      tpu.vector_store %arg6[%c0_16, %c0_17], %32 {strides = array<i32>} : memref<1x128xf32, #tpu.memory_space<vmem>>, vector<1x128xf32>,
    } else {
    }
    %c0 = arith.constant 0 : index
    %c0_1 = arith.constant 0 : index
    %3 = vector.load %arg2[%c0, %c0_1] : memref<16x1024xbf16, #tpu.memory_space<vmem>>, vector<16x1024xbf16>
    %c0_2 = arith.constant 0 : index
    %c0_3 = arith.constant 0 : index
    %4 = vector.load %arg3[%c0_2, %c0_3] : memref<1024x128xbf16, #tpu.memory_space<vmem>>, vector<1024x128xbf16>
    %cst = arith.constant dense<0.000000e+00> : vector<16x128xf32>
    %5 = tpu.matmul %3, %4, %cst {dimension_numbers = #tpu.dot_dimension_numbers<[1], [0], [0], [1], [0, 0, 1, 1], [], []>} : vector<16x1024xbf16>, vector<1024x128xbf16>, vector<16x128xf32> -> vector<16x128xf32>
    %c0_4 = arith.constant 0 : index
    %c0_5 = arith.constant 0 : index
    %6 = vector.load %arg4[%c0_4, %c0_5] : memref<1x128xf32, #tpu.memory_space<vmem>>, vector<1x128xf32>
    %7 = vector.broadcast %6 : vector<1x128xf32> to vector<16x128xf32>
    %8 = arith.addf %5, %7 : vector<16x128xf32>
    %c16_i32 = arith.constant 16 : i32
    %9 = arith.muli %c16_i32, %arg1 : i32
    %10 = tpu.iota {dimensions = array<i32: 0>} : vector<16x1xi32>
    %11 = vector.broadcast %9 : i32 to vector<16x1xi32>
    %12 = arith.addi %11, %10 : vector<16x1xi32>
    %c16_i32_6 = arith.constant 16 : i32
    %13 = vector.broadcast %c16_i32_6 : i32 to vector<16x1xi32>
    %14 = arith.cmpi slt, %12, %13 : vector<16x1xi32>
    %15 = arith.extui %14 : vector<16x1xi1> to vector<16x1xi32>
    %16 = arith.sitofp %15 : vector<16x1xi32> to vector<16x1xf32>
    %c0_7 = arith.constant 0 : index
    %c0_8 = arith.constant 0 : index
    %17 = vector.load %arg6[%c0_7, %c0_8] : memref<1x128xf32, #tpu.memory_space<vmem>>, vector<1x128xf32>
    %18 = arith.negf %8 : vector<16x128xf32>
    %19 = math.exp %18 : vector<16x128xf32>
    %cst_9 = arith.constant 1.000000e+00 : f32
    %20 = vector.broadcast %cst_9 : f32 to vector<16x128xf32>
    %21 = arith.addf %20, %19 : vector<16x128xf32>
    %22 = arith.divf %20, %21 : vector<16x128xf32>
    %23 = vector.broadcast %16 : vector<16x1xf32> to vector<16x128xf32>
    %24 = arith.mulf %22, %23 : vector<16x128xf32>
    %cst_10 = arith.constant dense<0.000000e+00> : vector<128xf32>
    %25 = vector.multi_reduction <add>, %24, %cst_10 [0] : vector<16x128xf32> to vector<128xf32>
    %26 = vector.shape_cast %25 : vector<128xf32> to vector<1x128xf32>
    %27 = arith.addf %17, %26 : vector<1x128xf32>
    %c0_11 = arith.constant 0 : index
    %c0_12 = arith.constant 0 : index
    %28 = vector.load %arg6[%c0_11, %c0_12] : memref<1x128xf32, #tpu.memory_space<vmem>>, vector<1x128xf32>
    tpu.vector_store %arg6[%c0_11, %c0_12], %27 {strides = array<i32>} : memref<1x128xf32, #tpu.memory_space<vmem>>, vector<1x128xf32>,
    %c0_i32_13 = arith.constant 0 : i32
    %29 = arith.cmpi eq, %arg1, %c0_i32_13 : i32
    %30 = arith.extui %29 : i1 to i32
    %c0_i32_14 = arith.constant 0 : i32
    %31 = arith.cmpi ne, %30, %c0_i32_14 : i32
    scf.if %31 {
      %c0_15 = arith.constant 0 : index
      %c0_16 = arith.constant 0 : index
      %32 = vector.load %arg6[%c0_15, %c0_16] : memref<1x128xf32, #tpu.memory_space<vmem>>, vector<1x128xf32>
      %cst_17 = arith.constant 6.250000e-02 : f32
      %33 = vector.broadcast %cst_17 : f32 to vector<1x128xf32>
      %34 = arith.mulf %32, %33 : vector<1x128xf32>
      %35 = vector.shape_cast %34 : vector<1x128xf32> to vector<1x1x128xf32>
      %36 = vector.shape_cast %35 : vector<1x1x128xf32> to vector<1x1x128xf32>
      %37 = vector.broadcast %36 : vector<1x1x128xf32> to vector<1x8x128xf32>
      %c0_18 = arith.constant 0 : index
      %c0_19 = arith.constant 0 : index
      %c0_20 = arith.constant 0 : index
      %38 = vector.load %arg5[%c0_18, %c0_19, %c0_20] : memref<1x8x128xf32, #tpu.memory_space<vmem>>, vector<1x8x128xf32>
      tpu.vector_store %arg5[%c0_18, %c0_19, %c0_20], %37 {strides = array<i32>} : memref<1x8x128xf32, #tpu.memory_space<vmem>>, vector<1x8x128xf32>,
    } else {
    }
    return
  }
  func.func @transform_0(%arg0: i32, %arg1: i32) -> (i32, i32) {
    %c1_i32 = arith.constant 1 : i32
    %0 = arith.muli %arg0, %c1_i32 : i32
    %1 = arith.addi %0, %arg1 : i32
    %c0_i32 = arith.constant 0 : i32
    %c0_i32_0 = arith.constant 0 : i32
    return %1, %c0_i32 : i32, i32
  }
  func.func @transform_1(%arg0: i32, %arg1: i32) -> (i32, i32) {
    %c0_i32 = arith.constant 0 : i32
    %c0_i32_0 = arith.constant 0 : i32
    %c0_i32_1 = arith.constant 0 : i32
    return %c0_i32, %c0_i32_0 : i32, i32
  }
  func.func @transform_2(%arg0: i32, %arg1: i32) -> (i32, i32) {
    %c0_i32 = arith.constant 0 : i32
    %c0_i32_0 = arith.constant 0 : i32
    %c0_i32_1 = arith.constant 0 : i32
    return %c0_i32, %c0_i32_0 : i32, i32
  }
  func.func @transform_3(%arg0: i32, %arg1: i32) -> (i32, i32, i32) {
    %c0_i32 = arith.constant 0 : i32
    %c0_i32_0 = arith.constant 0 : i32
    %c0_i32_1 = arith.constant 0 : i32
    return %arg0, %c0_i32, %c0_i32_0 : i32, i32, i32
  }
}

</mosaic_0001>

<bundles_post_ra>
// kernel: cpatch_discriminator.4
= control target key start
LH: loop header
LB: loop body
LE: loop exit
PB: predicated region body
PF: predicated region fallthrough
CT: control target
= control target key end

     0   :  { %s1190_s12 = smov 0   ;;  %s1317_s0 = inlined_call_operand.vmem [shape: bf16[512,128], index: 0, kind: input, shape index: {}]   ;;  %s1318_s1 = inlined_call_operand.vmem [shape: bf16[128,128], index: 1, kind: input, shape index: {}]   ;;  %s1319_s2 = inlined_call_operand.vmem [shape: f32[1,128], index: 2, kind: input, shape index: {}]   ;;  %s1320_s3 = inlined_call_operand.vmem [shape: bf16[512,128], index: 3, kind: output, shape index: {}]  }
   0x1 LB: > { %s847_s13 = sadd.s32 4294967295, %s1168_s12   ;;  %p851_p0 = scmp.ge.s32.totalorder %s1168_s12, 1  ;;  %s1168_s12 = sphi %s1190_s12, %s13_s12  }
   0x2   : > { %p138_p1 = scmp.lt.s32.totalorder %s1168_s12, 3 }
   0x4   : > { %p139_p2 = pnand %p851_p0, %p138_p1 }
   0x5   : > { %v1138_v0 = vld [vmem:[%s1318_s1] sm:$0xff] (!%p139_p2)   ;;  %s852_s16 = sshll.u32 (!%p139_p2), %s847_s13, 5  ;;  %v1139_v1 = vld [vmem:[%s1318_s1 + $0x8] sm:$0xff] (!%p139_p2)   ;;  %v1140_v2 = vld [vmem:[%s1318_s1 + $0x10] sm:$0xff] (!%p139_p2)  }
   0x6   : > { %142 = sbr.rel (%p139_p2) target bundleno = 293 (0x125), region = 32  ;;  %p163_p3 = scmp.lt.s32.totalorder (!%p139_p2), %s852_s16, 63  ;;  %1066 = vmatprep.subr.bf16.mxu0 (!%p139_p2), %v1138_v0  ;;  %1114 = vmatprep.subr.bf16.mxu1 (!%p139_p2), %v1138_v0  ;;  %v1141_v3 = vld [vmem:[%s1318_s1 + $0x18] sm:$0xff] (!%p139_p2)   ;;  %v1142_v6 = vld [vmem:[%s1318_s1 + $0x20] sm:$0xff] (!%p139_p2)   ;;  %v1143_v7 = vld [vmem:[%s1318_s1 + $0x28] sm:$0xff] (!%p139_p2)  }
   0x7   : > { %1067 = vmatpush3.bf16.msra.mxu0 (!%p139_p2), %v1138_v0  ;;  %1122 = vmatpush3.bf16.msra.mxu1 (!%p139_p2), %v1138_v0  ;;  %v1144_v8 = vld [vmem:[%s1318_s1 + $0x30] sm:$0xff] (!%p139_p2)   ;;  %v1145_v9 = vld [vmem:[%s1318_s1 + $0x38] sm:$0xff] (!%p139_p2)   ;;  %v1251_v24 = vld [vmem:[%s1319_s2] ss:$0 sm:$0xff] (!%p139_p2) }
   0x8   : > { %1068 = vmatprep.subr.bf16.mxu0 (!%p139_p2), %v1139_v1  ;;  %1115 = vmatprep.subr.bf16.mxu1 (!%p139_p2), %v1139_v1 }
   0xb   : > { %1069 = vmatpush3.bf16.msra.mxu0 (!%p139_p2), %v1139_v1  ;;  %1123 = vmatpush3.bf16.msra.mxu1 (!%p139_p2), %v1139_v1 }
   0xc   : > { %1070 = vmatprep.subr.bf16.mxu0 (!%p139_p2), %v1140_v2  ;;  %1116 = vmatprep.subr.bf16.mxu1 (!%p139_p2), %v1140_v2 }
   0xd   : > { %s1322_s16 = smov (!%p163_p3, %s852_s16), 63 }
   0xe   : > { %s853_s21 = sshll.u32 %s1322_s16, 2 }
   0xf   : > { %s1215_s24 = scalar_lea.vmem %s1317_s0, %s853_s21  ;;  %1071 = vmatpush3.bf16.msra.mxu0 %v1140_v2  ;;  %1124 = vmatpush3.bf16.msra.mxu1 %v1140_v2  ;;  %s1268_s13 = scalar_lea.vmem %s1320_s3, %s853_s21 }
  0x10   : > { %v1146_v4 = vld [vmem:[%s1215_s24] sm:$0xff]   ;;  %1072 = vmatprep.subr.bf16.mxu0 %v1141_v3  ;;  %1117 = vmatprep.subr.bf16.mxu1 %v1141_v3  ;;  %v1148_v10 = vld [vmem:[%s1215_s24 + $0x8] sm:$0xff]   ;;  %v1150_v12 = vld [vmem:[%s1215_s24 + $0x10] sm:$0xff]  }
  0x11   : > { %v1147_v5 = vld [vmem:[%s1215_s24 + $0x40] sm:$0xff]   ;;  %1082 = vmatprep.mubr.bf16.mxu0 %v1146_v4  ;;  %v1149_v11 = vld [vmem:[%s1215_s24 + $0x48] sm:$0xff]   ;;  %v1151_v13 = vld [vmem:[%s1215_s24 + $0x50] sm:$0xff]  }
  0x12   : > { %1098 = vmatprep.mubr.bf16.mxu1 %v1147_v5  ;;  %v1152_v14 = vld [vmem:[%s1215_s24 + $0x18] sm:$0xff]   ;;  %v1154_v16 = vld [vmem:[%s1215_s24 + $0x20] sm:$0xff]   ;;  %v1156_v18 = vld [vmem:[%s1215_s24 + $0x28] sm:$0xff]  }
  0x13   : > { %1073 = vmatpush3.bf16.msra.mxu0 %v1141_v3  ;;  %1125 = vmatpush3.bf16.msra.mxu1 %v1141_v3  ;;  %v1153_v15 = vld [vmem:[%s1215_s24 + $0x58] sm:$0xff]   ;;  %v1155_v17 = vld [vmem:[%s1215_s24 + $0x60] sm:$0xff]   ;;  %v1157_v19 = vld [vmem:[%s1215_s24 + $0x68] sm:$0xff]  }
  0x14   : > { %1074 = vmatprep.subr.bf16.mxu0 %v1142_v6  ;;  %1118 = vmatprep.subr.bf16.mxu1 %v1142_v6  ;;  %v1158_v20 = vld [vmem:[%s1215_s24 + $0x30] sm:$0xff]   ;;  %v1160_v22 = vld [vmem:[%s1215_s24 + $0x38] sm:$0xff]  }
  0x15   : > { %v1159_v21 = vld [vmem:[%s1215_s24 + $0x70] sm:$0xff]   ;;  %v1161_v23 = vld [vmem:[%s1215_s24 + $0x78] sm:$0xff]  }
  0x17   : > { %1075 = vmatpush3.bf16.msra.mxu0 %v1142_v6  ;;  %1126 = vmatpush3.bf16.msra.mxu1 %v1142_v6 }
  0x18   : > { %1076 = vmatprep.subr.bf16.mxu0 %v1143_v7  ;;  %1119 = vmatprep.subr.bf16.mxu1 %v1143_v7 }
  0x1b   : > { %1077 = vmatpush3.bf16.msra.mxu0 %v1143_v7  ;;  %1127 = vmatpush3.bf16.msra.mxu1 %v1143_v7 }
  0x1c   : > { %1078 = vmatprep.subr.bf16.mxu0 %v1144_v8  ;;  %1120 = vmatprep.subr.bf16.mxu1 %v1144_v8 }
  0x1f   : > { %1079 = vmatpush3.bf16.msra.mxu0 %v1144_v8  ;;  %1128 = vmatpush3.bf16.msra.mxu1 %v1144_v8 }
  0x20   : > { %1080 = vmatprep.subr.bf16.mxu0 %v1145_v9  ;;  %1121 = vmatprep.subr.bf16.mxu1 %v1145_v9 }
  0x23   : > { %1081 = vmatpush3.bf16.msra.mxu0 %v1145_v9  ;;  %1129 = vmatpush3.bf16.msra.mxu1 %v1145_v9 }
  0x26   : > { %1083 = vmatmul.mubr.bf16.vlgmr.msra.gmra.mrb[0].mxu0 %v1148_v10  ;;  %1099 = vmatmul.mubr.bf16.vlgmr.msra.gmra.mrb[0].mxu1 %v1149_v11 }
  0x27   : > { %1086 = vmatprep.mubr.bf16.mxu0 %v1150_v12  ;;  %1102 = vmatprep.mubr.bf16.mxu1 %v1151_v13 }
  0x2e   : > { %1087 = vmatmul.mubr.bf16.gmra.mrb[4].mxu0 %v1152_v14  ;;  %1103 = vmatmul.mubr.bf16.gmra.mrb[4].mxu1 %v1153_v15 }
  0x2f   : > { %1090 = vmatprep.mubr.bf16.mxu0 %v1154_v16  ;;  %1106 = vmatprep.mubr.bf16.mxu1 %v1155_v17 }
  0x36   : > { %1091 = vmatmul.mubr.bf16.gmra.mrb[8].mxu0 %v1156_v18  ;;  %1107 = vmatmul.mubr.bf16.gmra.mrb[8].mxu1 %v1157_v19 }
  0x37   : > { %1094 = vmatprep.mubr.bf16.mxu0 %v1158_v20  ;;  %1110 = vmatprep.mubr.bf16.mxu1 %v1159_v21 }
  0x3e   : > { %1095 = vmatmul.mubr.bf16.gmra.mrb[12].mxu0 %v1160_v22  ;;  %1111 = vmatmul.mubr.bf16.gmra.mrb[12].mxu1 %v1161_v23 }
  0xf9   : > { %v1084_v25 = vpop.f32.mrb[0].mxu0  ;;  %v1100_v26 = vpop.f32.mrb[0].mxu1 }
  0xfa   : > { %v417_v27 = vadd.f32 %v1084_v25, %v1251_v24  ;;  %v481_v28 = vadd.f32 %v1100_v26, %v1251_v24  ;;  %v408_v29 = vpop.f32.mrb[1].mxu0  ;;  %v472_v30 = vpop.f32.mrb[1].mxu1 }
  0xfb   : > { %v409_v31 = vadd.f32 %v1251_v24, %v408_v29  ;;  %v473_v32 = vadd.f32 %v1251_v24, %v472_v30  ;;  %v1085_v33 = vpop.f32.mrb[2].mxu0  ;;  %v1101_v34 = vpop.f32.mrb[2].mxu1 }
  0xfc   : > { %vm537_vm0 = vcmp.ge.f32.partialorder %v417_v27, 0.0  ;;  %v569_v35 = vmul.f32 0.2, %v417_v27  ;;  %vm553_vm1 = vcmp.ge.f32.partialorder %v481_v28, 0.0  ;;  %v585_v36 = vmul.f32 0.2, %v481_v28 }
  0xfd   : > { %vm535_vm2 = vcmp.ge.f32.partialorder %v409_v31, 0.0  ;;  %v567_v37 = vmul.f32 0.2, %v409_v31  ;;  %vm551_vm3 = vcmp.ge.f32.partialorder %v473_v32, 0.0  ;;  %v583_v38 = vmul.f32 0.2, %v473_v32 }
  0xfe   : > { %v420_v39 = vadd.f32 %v1085_v33, %v1251_v24  ;;  %v484_v40 = vadd.f32 %v1101_v34, %v1251_v24  ;;  %v411_v41 = vpop.f32.mrb[3].mxu0  ;;  %v475_v42 = vpop.f32.mrb[3].mxu1  ;;  %v601_v43 = vsel %vm537_vm0, %v417_v27, %v569_v35  ;;  %v617_v44 = vsel %vm553_vm1, %v481_v28, %v585_v36 }
  0xff   : > { %v412_v45 = vadd.f32 %v1251_v24, %v411_v41  ;;  %v476_v46 = vadd.f32 %v1251_v24, %v475_v42  ;;  %v599_v51 = vsel %vm535_vm2, %v409_v31, %v567_v37  ;;  %v615_v52 = vsel %vm551_vm3, %v473_v32, %v583_v38 }
 0x100   : > { %vm538_vm4 = vcmp.ge.f32.partialorder %v420_v39, 0.0  ;;  %v570_v47 = vmul.f32 0.2, %v420_v39  ;;  %vm554_vm5 = vcmp.ge.f32.partialorder %v484_v40, 0.0  ;;  %v586_v48 = vmul.f32 0.2, %v484_v40 }
 0x101   : > { %vm536_vm6 = vcmp.ge.f32.partialorder %v412_v45, 0.0  ;;  %v568_v49 = vmul.f32 0.2, %v412_v45  ;;  %vm552_vm7 = vcmp.ge.f32.partialorder %v476_v46, 0.0  ;;  %v584_v50 = vmul.f32 0.2, %v476_v46 }
 0x102   : > { %v602_v53 = vsel %vm538_vm4, %v420_v39, %v570_v47  ;;  %v618_v54 = vsel %vm554_vm5, %v484_v40, %v586_v48  ;;  %v1088_v55 = vpop.f32.mrb[4].mxu0  ;;  %v1104_v56 = vpop.f32.mrb[4].mxu1 }
 0x103   : > { %v955_v57 = vpack.c.bf16 %v602_v53, %v601_v43  ;;  %v995_v58 = vpack.c.bf16 %v618_v54, %v617_v44  ;;  %v600_v59 = vsel %vm536_vm6, %v412_v45, %v568_v49  ;;  %v616_v60 = vsel %vm552_vm7, %v476_v46, %v584_v50  ;;  %v424_v61 = vpop.f32.mrb[5].mxu0  ;;  %v488_v62 = vpop.f32.mrb[5].mxu1 }
 0x104   : > { %v950_v63 = vpack.c.bf16 %v600_v59, %v599_v51  ;;  %v990_v0 = vpack.c.bf16 %v616_v60, %v615_v52  ;;  %v433_v1 = vadd.f32 %v1088_v55, %v1251_v24  ;;  %v497_v2 = vadd.f32 %v1104_v56, %v1251_v24  ;;  %v1089_v3 = vpop.f32.mrb[6].mxu0  ;;  %v1105_v4 = vpop.f32.mrb[6].mxu1 }
 0x105   : > { %1027 = vst [vmem:[%s1268_s13 + $0x8] sm:$0xff] %v955_v57   ;;  %1035 = vst [vmem:[%s1268_s13 + $0x48] sm:$0xff] %v995_v58   ;;  %v425_v5 = vadd.f32 %v1251_v24, %v424_v61  ;;  %v489_v6 = vadd.f32 %v1251_v24, %v488_v62  ;;  %v436_v7 = vadd.f32 %v1089_v3, %v1251_v24  ;;  %v427_v9 = vpop.f32.mrb[7].mxu0  ;;  %v491_v10 = vpop.f32.mrb[7].mxu1 }
 0x106   : > { %v500_v8 = vadd.f32 %v1105_v4, %v1251_v24  ;;  %951 = vst [vmem:[%s1268_s13] sm:$0xff] %v950_v63   ;;  %1034 = vst [vmem:[%s1268_s13 + $0x40] sm:$0xff] %v990_v0   ;;  %vm541_vm8 = vcmp.ge.f32.partialorder %v433_v1, 0.0  ;;  %v573_v11 = vmul.f32 0.2, %v433_v1  ;;  %vm557_vm9 = vcmp.ge.f32.partialorder %v497_v2, 0.0 }
 0x107   : > { %v589_v12 = vmul.f32 0.2, %v497_v2  ;;  %vm539_vm10 = vcmp.ge.f32.partialorder %v425_v5, 0.0  ;;  %v571_v13 = vmul.f32 0.2, %v425_v5  ;;  %vm555_vm11 = vcmp.ge.f32.partialorder %v489_v6, 0.0 }
 0x108   : > { %v605_v14 = vsel %vm541_vm8, %v433_v1, %v573_v11  ;;  %v587_v15 = vmul.f32 0.2, %v489_v6  ;;  %vm542_vm12 = vcmp.ge.f32.partialorder %v436_v7, 0.0  ;;  %v574_v16 = vmul.f32 0.2, %v436_v7 }
 0x109   : > { %v621_v17 = vsel %vm557_vm9, %v497_v2, %v589_v12  ;;  %v603_v18 = vsel %vm539_vm10, %v425_v5, %v571_v13  ;;  %vm558_vm13 = vcmp.ge.f32.partialorder %v500_v8, 0.0  ;;  %v590_v19 = vmul.f32 0.2, %v500_v8  ;;  %v1092_v20 = vpop.f32.mrb[8].mxu0  ;;  %v1108_v21 = vpop.f32.mrb[8].mxu1 }
 0x10a   : > { %v606_v22 = vsel %vm542_vm12, %v436_v7, %v574_v16  ;;  %v428_v23 = vadd.f32 %v1251_v24, %v427_v9  ;;  %v492_v25 = vadd.f32 %v1251_v24, %v491_v10  ;;  %v449_v26 = vadd.f32 %v1092_v20, %v1251_v24  ;;  %v440_v27 = vpop.f32.mrb[9].mxu0  ;;  %v504_v28 = vpop.f32.mrb[9].mxu1 }
 0x10b   : > { %v965_v29 = vpack.c.bf16 %v606_v22, %v605_v14  ;;  %v622_v30 = vsel %vm558_vm13, %v500_v8, %v590_v19  ;;  %v513_v31 = vadd.f32 %v1108_v21, %v1251_v24  ;;  %v441_v32 = vadd.f32 %v1251_v24, %v440_v27  ;;  %v1093_v33 = vpop.f32.mrb[10].mxu0  ;;  %v1109_v34 = vpop.f32.mrb[10].mxu1 }
 0x10c   : > { %v1005_v35 = vpack.c.bf16 %v622_v30, %v621_v17  ;;  %vm540_vm14 = vcmp.ge.f32.partialorder %v428_v23, 0.0  ;;  %v572_v36 = vmul.f32 0.2, %v428_v23  ;;  %vm556_vm15 = vcmp.ge.f32.partialorder %v492_v25, 0.0  ;;  %v443_v37 = vpop.f32.mrb[11].mxu0  ;;  %v507_v38 = vpop.f32.mrb[11].mxu1 }
 0x10d   : > { %1029 = vst [vmem:[%s1268_s13 + $0x18] sm:$0xff] %v965_v29   ;;  %v588_v39 = vmul.f32 0.2, %v492_v25  ;;  %vm545_vm0 = vcmp.ge.f32.partialorder %v449_v26, 0.0  ;;  %v577_v40 = vmul.f32 0.2, %v449_v26  ;;  %v619_v41 = vsel %vm555_vm11, %v489_v6, %v587_v15 }
 0x10e   : > { %vm561_vm1 = vcmp.ge.f32.partialorder %v513_v31, 0.0  ;;  %1037 = vst [vmem:[%s1268_s13 + $0x58] sm:$0xff] %v1005_v35   ;;  %v604_v42 = vsel %vm540_vm14, %v428_v23, %v572_v36  ;;  %v593_v43 = vmul.f32 0.2, %v513_v31  ;;  %vm543_vm2 = vcmp.ge.f32.partialorder %v441_v32, 0.0 }
 0x10f   : > { %v960_v44 = vpack.c.bf16 %v604_v42, %v603_v18  ;;  %v620_v45 = vsel %vm556_vm15, %v492_v25, %v588_v39  ;;  %v575_v46 = vmul.f32 0.2, %v441_v32  ;;  %v505_v47 = vadd.f32 %v1251_v24, %v504_v28 }
 0x110   : > { %v1000_v48 = vpack.c.bf16 %v620_v45, %v619_v41  ;;  %v609_v49 = vsel %vm545_vm0, %v449_v26, %v577_v40  ;;  %v625_v50 = vsel %vm561_vm1, %v513_v31, %v593_v43  ;;  %v452_v51 = vadd.f32 %v1093_v33, %v1251_v24 }
 0x111   : > { %1028 = vst [vmem:[%s1268_s13 + $0x10] sm:$0xff] %v960_v44   ;;  %vm559_vm3 = vcmp.ge.f32.partialorder %v505_v47, 0.0  ;;  %v591_v52 = vmul.f32 0.2, %v505_v47  ;;  %v516_v53 = vadd.f32 %v1109_v34, %v1251_v24  ;;  %v444_v54 = vadd.f32 %v1251_v24, %v443_v37  ;;  %v1096_v55 = vpop.f32.mrb[12].mxu0  ;;  %v1112_v56 = vpop.f32.mrb[12].mxu1 }
 0x112   : > { %1036 = vst [vmem:[%s1268_s13 + $0x50] sm:$0xff] %v1000_v48   ;;  %vm546_vm4 = vcmp.ge.f32.partialorder %v452_v51, 0.0  ;;  %v578_v57 = vmul.f32 0.2, %v452_v51  ;;  %v508_v58 = vadd.f32 %v1251_v24, %v507_v38  ;;  %v465_v59 = vadd.f32 %v1096_v55, %v1251_v24  ;;  %v456_v60 = vpop.f32.mrb[13].mxu0  ;;  %v520_v61 = vpop.f32.mrb[13].mxu1 }
 0x113   : > { %v607_v62 = vsel %vm543_vm2, %v441_v32, %v575_v46  ;;  %vm562_vm5 = vcmp.ge.f32.partialorder %v516_v53, 0.0  ;;  %v594_v63 = vmul.f32 0.2, %v516_v53  ;;  %vm544_vm6 = vcmp.ge.f32.partialorder %v444_v54, 0.0  ;;  %v1097_v0 = vpop.f32.mrb[14].mxu0  ;;  %v1113_v1 = vpop.f32.mrb[14].mxu1 }
 0x114   : > { %v610_v2 = vsel %vm546_vm4, %v452_v51, %v578_v57  ;;  %v576_v3 = vmul.f32 0.2, %v444_v54  ;;  %vm560_vm7 = vcmp.ge.f32.partialorder %v508_v58, 0.0  ;;  %v592_v4 = vmul.f32 0.2, %v508_v58  ;;  %v459_v5 = vpop.f32.mrb[15].mxu0 }
 0x115   : > { %v623_v6 = vsel %vm559_vm3, %v505_v47, %v591_v52  ;;  %v975_v7 = vpack.c.bf16 %v610_v2, %v609_v49  ;;  %v626_v8 = vsel %vm562_vm5, %v516_v53, %v594_v63  ;;  %v581_v9 = vmul.f32 0.2, %v465_v59  ;;  %v523_v10 = vpop.f32.mrb[15].mxu1 }
 0x116   : > { %v1015_v11 = vpack.c.bf16 %v626_v8, %v625_v50  ;;  %v608_v12 = vsel %vm544_vm6, %v444_v54, %v576_v3  ;;  %v624_v13 = vsel %vm560_vm7, %v508_v58, %v592_v4  ;;  %v529_v14 = vadd.f32 %v1112_v56, %v1251_v24 }
 0x117   : > { %1031 = vst [vmem:[%s1268_s13 + $0x28] sm:$0xff] %v975_v7   ;;  %v970_v15 = vpack.c.bf16 %v608_v12, %v607_v62  ;;  %v1010_v16 = vpack.c.bf16 %v624_v13, %v623_v6  ;;  %vm549_vm8 = vcmp.ge.f32.partialorder %v465_v59, 0.0  ;;  %v457_v17 = vadd.f32 %v1251_v24, %v456_v60 }
 0x118   : > { %1039 = vst [vmem:[%s1268_s13 + $0x68] sm:$0xff] %v1015_v11   ;;  %vm565_vm9 = vcmp.ge.f32.partialorder %v529_v14, 0.0  ;;  %v597_v18 = vmul.f32 0.2, %v529_v14  ;;  %v521_v19 = vadd.f32 %v1251_v24, %v520_v61  ;;  %v468_v20 = vadd.f32 %v1097_v0, %v1251_v24 }
 0x119   : > { %1030 = vst [vmem:[%s1268_s13 + $0x20] sm:$0xff] %v970_v15   ;;  %1038 = vst [vmem:[%s1268_s13 + $0x60] sm:$0xff] %v1010_v16   ;;  %v579_v21 = vmul.f32 0.2, %v457_v17  ;;  %v532_v22 = vadd.f32 %v1113_v1, %v1251_v24  ;;  %v460_v23 = vadd.f32 %v1251_v24, %v459_v5  ;;  %v613_v25 = vsel %vm549_vm8, %v465_v59, %v581_v9 }
 0x11a   : > { %vm547_vm10 = vcmp.ge.f32.partialorder %v457_v17, 0.0  ;;  %vm550_vm11 = vcmp.ge.f32.partialorder %v468_v20, 0.0  ;;  %v629_v26 = vsel %vm565_vm9, %v529_v14, %v597_v18  ;;  %v582_v27 = vmul.f32 0.2, %v468_v20 }
 0x11b   : > { %vm566_vm12 = vcmp.ge.f32.partialorder %v532_v22, 0.0  ;;  %v598_v28 = vmul.f32 0.2, %v532_v22  ;;  %vm563_vm13 = vcmp.ge.f32.partialorder %v521_v19, 0.0  ;;  %vm548_vm14 = vcmp.ge.f32.partialorder %v460_v23, 0.0 }
 0x11c   : > { %v580_v29 = vmul.f32 0.2, %v460_v23  ;;  %v524_v30 = vadd.f32 %v1251_v24, %v523_v10  ;;  %v611_v31 = vsel %vm547_vm10, %v457_v17, %v579_v21  ;;  %v595_v32 = vmul.f32 0.2, %v521_v19 }
 0x11d   : > { %v614_v33 = vsel %vm550_vm11, %v468_v20, %v582_v27  ;;  %v630_v34 = vsel %vm566_vm12, %v532_v22, %v598_v28 }
 0x11e   : > { %v985_v35 = vpack.c.bf16 %v614_v33, %v613_v25  ;;  %v1025_v36 = vpack.c.bf16 %v630_v34, %v629_v26  ;;  %v612_v37 = vsel %vm548_vm14, %v460_v23, %v580_v29  ;;  %vm564_vm15 = vcmp.ge.f32.partialorder %v524_v30, 0.0 }
 0x11f   : > { %v980_v38 = vpack.c.bf16 %v612_v37, %v611_v31  ;;  %v596_v39 = vmul.f32 0.2, %v524_v30  ;;  %v627_v40 = vsel %vm563_vm13, %v521_v19, %v595_v32 }
 0x120   : > { %1033 = vst [vmem:[%s1268_s13 + $0x38] sm:$0xff] %v985_v35   ;;  %1041 = vst [vmem:[%s1268_s13 + $0x78] sm:$0xff] %v1025_v36  }
 0x121   : > { %1032 = vst [vmem:[%s1268_s13 + $0x30] sm:$0xff] %v980_v38   ;;  %v628_v41 = vsel %vm564_vm15, %v524_v30, %v596_v39 }
 0x122   : > { %v1020_v42 = vpack.c.bf16 %v628_v41, %v627_v40 }
 0x124   : > { %1040 = vst [vmem:[%s1268_s13 + $0x70] sm:$0xff] %v1020_v42  }
 0x125 PF: > { %s13_s12 = sadd.s32 1, %s1168_s12  }
 0x126   : > { %p10_p4 = scmp.ge.s32.totalorder %s13_s12, 4  }
 0x128   :  { %12 = sbr.rel (!%p10_p4) target bundleno = 1 (0x1), region = 62 }

// kernel: cpatch_discriminator.5
= control target key start
LH: loop header
LB: loop body
LE: loop exit
PB: predicated region body
PF: predicated region fallthrough
CT: control target
= control target key end

     0   :  { %s1141_s15 = smov 0   ;;  %s1337_s0 = inlined_call_operand.vmem [shape: bf16[128,512], index: 0, kind: input, shape index: {}]   ;;  %s1338_s1 = inlined_call_operand.vmem [shape: bf16[512,128], index: 1, kind: input, shape index: {}]   ;;  %s1339_s2 = inlined_call_operand.vmem [shape: f32[1,128], index: 2, kind: input, shape index: {}]   ;;  %s1340_s3 = inlined_call_operand.vmem [shape: f32[128,128], index: 3, kind: output, shape index: {0}]   ;;  %s1341_s4 = inlined_call_operand.vmem [shape: f32[2,8,128], index: 4, kind: output, shape index: {1}]  }
   0x1 LB: > { %s1147_s16 = sadd.s32 4294967295, %s1113_s15   ;;  %p894_p0 = scmp.ge.s32.totalorder %s1113_s15, 1  ;;  %s1113_s15 = sphi %s1141_s15, %s15_s15  }
   0x2   : > { %p167_p1 = scmp.lt.s32.totalorder %s1113_s15, 3 }
   0x4   : > { %p168_p2 = pnand %p894_p0, %p167_p1 }
   0x5   : > { %v1051_v0 = vld [vmem:[%s1338_s1 + $0x40] sm:$0xff] (!%p168_p2)   ;;  %v1055_v4 = vld [vmem:[%s1338_s1 + $0x48] sm:$0xff] (!%p168_p2)   ;;  %v1059_v8 = vld [vmem:[%s1338_s1 + $0x50] sm:$0xff] (!%p168_p2)   ;;  %s895_s25 = sshll.u32 (!%p168_p2), %s1147_s16, 3  ;;  %v714_v48 = vlaneseq (!%p168_p2)  ;;  %s950_s13 = sshll.u32 (!%p168_p2), %s1147_s16, 6  ;;  %vm798_vm8 = vcmask (!%p168_p2), 1040384  }
   0x6   : > { %171 = sbr.rel (%p168_p2) target bundleno = 305 (0x131), region = 32  ;;  %v1052_v1 = vld [vmem:[%s1338_s1 + $0xc0] sm:$0xff] (!%p168_p2)   ;;  %962 = vmatprep.subr.bf16.mxu0 (!%p168_p2), %v1051_v0  ;;  %v1056_v5 = vld [vmem:[%s1338_s1 + $0xc8] sm:$0xff] (!%p168_p2)   ;;  %v1060_v9 = vld [vmem:[%s1338_s1 + $0xd0] sm:$0xff] (!%p168_p2)   ;;  %p199_p3 = scmp.lt.s32.totalorder (!%p168_p2), %s895_s25, 15  ;;  %v1275_v50 = vstv (!%p168_p2), %s950_s13  ;;  %vm800_vm9 = vcmask (!%p168_p2), 1041408  }
   0x7   : > { %v1053_v2 = vld [vmem:[%s1338_s1] sm:$0xff] (!%p168_p2)   ;;  %1002 = vmatprep.subr.bf16.mxu1 (!%p168_p2), %v1052_v1  ;;  %v1057_v6 = vld [vmem:[%s1338_s1 + $0x8] sm:$0xff] (!%p168_p2)   ;;  %v1061_v10 = vld [vmem:[%s1338_s1 + $0x10] sm:$0xff] (!%p168_p2)   ;;  %v1273_v49 = vshrl.u32 (!%p168_p2), %v714_v48, 7  ;;  %p211_p4 = scmp.lt.s32.totalorder (!%p168_p2), %s1147_s16, 1 }
   0x8   : > { %v1054_v3 = vld [vmem:[%s1338_s1 + $0x80] sm:$0xff] (!%p168_p2)   ;;  %963 = vmatpush3.bf16.msra.mxu0 (!%p168_p2), %v1053_v2  ;;  %v1058_v7 = vld [vmem:[%s1338_s1 + $0x88] sm:$0xff] (!%p168_p2)   ;;  %v1062_v11 = vld [vmem:[%s1338_s1 + $0x90] sm:$0xff] (!%p168_p2)  }
   0x9   : > { %1003 = vmatpush3.bf16.msra.mxu1 (!%p168_p2), %v1054_v3  ;;  %964 = vmatprep.subr.bf16.mxu0 (!%p168_p2), %v1055_v4  ;;  %v1063_v12 = vld [vmem:[%s1338_s1 + $0x58] sm:$0xff] (!%p168_p2)   ;;  %v1067_v16 = vld [vmem:[%s1338_s1 + $0x60] sm:$0xff] (!%p168_p2)   ;;  %v1071_v20 = vld [vmem:[%s1338_s1 + $0x68] sm:$0xff] (!%p168_p2)   ;;  %v716_v51 = vadd.s32 (!%p168_p2), 8, %v1273_v49  ;;  %v724_v52 = vadd.s32 (!%p168_p2), %v1275_v50, %v1273_v49  ;;  %v717_v61 = vadd.s32 (!%p168_p2), 16, %v1273_v49  ;;  %v718_v1 = vadd.s32 (!%p168_p2), 24, %v1273_v49 }
   0xa   : > { %1004 = vmatprep.subr.bf16.mxu1 (!%p168_p2), %v1056_v5  ;;  %v1064_v13 = vld [vmem:[%s1338_s1 + $0xd8] sm:$0xff] (!%p168_p2)   ;;  %v1068_v17 = vld [vmem:[%s1338_s1 + $0xe0] sm:$0xff] (!%p168_p2)   ;;  %v1072_v21 = vld [vmem:[%s1338_s1 + $0xe8] sm:$0xff] (!%p168_p2)   ;;  %v1115_v5 = vmov (!%p168_p2), 0.0  }
   0xb   : > { %v1065_v14 = vld [vmem:[%s1338_s1 + $0x18] sm:$0xff] (!%p168_p2)   ;;  %v1069_v18 = vld [vmem:[%s1338_s1 + $0x20] sm:$0xff] (!%p168_p2)   ;;  %v1073_v22 = vld [vmem:[%s1338_s1 + $0x28] sm:$0xff] (!%p168_p2)   ;;  %v725_v54 = vadd.s32 (!%p168_p2), %v1275_v50, %v716_v51  ;;  %vm732_vm0 = vcmp.lt.s32.totalorder (!%p168_p2), %v724_v52, 128 }
   0xc   : > { %965 = vmatpush3.bf16.msra.mxu0 (!%p168_p2), %v1057_v6  ;;  %v1066_v15 = vld [vmem:[%s1338_s1 + $0x98] sm:$0xff] (!%p168_p2)   ;;  %v1070_v19 = vld [vmem:[%s1338_s1 + $0xa0] sm:$0xff] (!%p168_p2)   ;;  %v1074_v23 = vld [vmem:[%s1338_s1 + $0xa8] sm:$0xff] (!%p168_p2)   ;;  %v951_v6 = vsel (!%p168_p2), %vm732_vm0, 1.0, %v1115_v5 }
   0xd   : > { %1005 = vmatpush3.bf16.msra.mxu1 %v1058_v7  ;;  %966 = vmatprep.subr.bf16.mxu0 %v1059_v8  ;;  %s1343_s25 = smov (!%p199_p3, %s895_s25), 15  ;;  %v1075_v24 = vld [vmem:[%s1338_s1 + $0x70] sm:$0xff]   ;;  %v1079_v28 = vld [vmem:[%s1338_s1 + $0x78] sm:$0xff]   ;;  %v1284_v56 = vld [vmem:[%s1339_s2] ss:$0 sm:$0xff]  ;;  %vm733_vm1 = vcmp.lt.s32.totalorder %v725_v54, 128 }
   0xe   : > { %1006 = vmatprep.subr.bf16.mxu1 %v1060_v9  ;;  %v1076_v25 = vld [vmem:[%s1338_s1 + $0xf0] sm:$0xff]   ;;  %s961_s24 = sshll.u32 %s1343_s25, 4  ;;  %v1080_v29 = vld [vmem:[%s1338_s1 + $0xf8] sm:$0xff]   ;;  %s899_s18 = sshll.u32 %s1343_s25, 3 }
   0xf   : > { %v1077_v26 = vld [vmem:[%s1338_s1 + $0x30] sm:$0xff]   ;;  %s1248_s8 = scalar_lea.vmem %s1337_s0, %s961_s24  ;;  %v1081_v30 = vld [vmem:[%s1338_s1 + $0x38] sm:$0xff]   ;;  %s1293_s21 = scalar_lea.vmem %s1340_s3, %s899_s18 }
  0x10   : > { %967 = vmatpush3.bf16.msra.mxu0 %v1061_v10  ;;  %v1078_v27 = vld [vmem:[%s1338_s1 + $0xb0] sm:$0xff]   ;;  %v1082_v31 = vld [vmem:[%s1338_s1 + $0xb8] sm:$0xff]   ;;  %v726_v10 = vadd.s32 %v1275_v50, %v717_v61  ;;  %s1345_s16 = smov (!%p211_p4, %s1147_s16), 1 }
  0x11   : > { %1007 = vmatpush3.bf16.msra.mxu1 %v1062_v11  ;;  %968 = vmatprep.subr.bf16.mxu0 %v1063_v12  ;;  %v1083_v32 = vld [vmem:[%s1248_s8] ss:$16 sps:$4 sm:$0xff]   ;;  %v1085_v33 = vld [vmem:[%s1248_s8 + $0x4] ss:$16 sps:$4 sm:$0xff]   ;;  %v1086_v34 = vld [vmem:[%s1248_s8 + $0x8] ss:$16 sps:$4 sm:$0xff]   ;;  %v727_v12 = vadd.s32 %v1275_v50, %v718_v1 }
  0x12   : > { %1008 = vmatprep.subr.bf16.mxu1 %v1064_v13  ;;  %v1088_v35 = vld [vmem:[%s1248_s8 + $0xc] ss:$16 sps:$4 sm:$0xff]   ;;  %607 = vmatprep.mubr.bf16.mxu0 %v1085_v33  ;;  %v1089_v36 = vld [vmem:[%s1248_s8 + $0x24] ss:$16 sps:$4 sm:$0xff]   ;;  %v1093_v38 = vld [vmem:[%s1248_s8 + $0x20] ss:$16 sps:$4 sm:$0xff]  }
  0x13   : > { %672 = vmatprep.mubr.bf16.mxu1 %v1088_v35  ;;  %v1091_v37 = vld [vmem:[%s1248_s8 + $0x2c] ss:$16 sps:$4 sm:$0xff]   ;;  %v1094_v39 = vld [vmem:[%s1248_s8 + $0x28] ss:$16 sps:$4 sm:$0xff]   ;;  %v1095_v40 = vld [vmem:[%s1248_s8 + $0x44] ss:$16 sps:$4 sm:$0xff]  }
  0x14   : > { %969 = vmatpush3.bf16.msra.mxu0 %v1065_v14  ;;  %v1097_v41 = vld [vmem:[%s1248_s8 + $0x4c] ss:$16 sps:$4 sm:$0xff]   ;;  %v1099_v42 = vld [vmem:[%s1248_s8 + $0x40] ss:$16 sps:$4 sm:$0xff]   ;;  %v1100_v43 = vld [vmem:[%s1248_s8 + $0x48] ss:$16 sps:$4 sm:$0xff]  }
  0x15   : > { %1009 = vmatpush3.bf16.msra.mxu1 %v1066_v15  ;;  %970 = vmatprep.subr.bf16.mxu0 %v1067_v16  ;;  %v1101_v44 = vld [vmem:[%s1248_s8 + $0x64] ss:$16 sps:$4 sm:$0xff]   ;;  %v1103_v45 = vld [vmem:[%s1248_s8 + $0x6c] ss:$16 sps:$4 sm:$0xff]   ;;  %v1105_v46 = vld [vmem:[%s1248_s8 + $0x60] ss:$16 sps:$4 sm:$0xff]  }
  0x16   : > { %1010 = vmatprep.subr.bf16.mxu1 %v1068_v17  ;;  %v1106_v47 = vld [vmem:[%s1248_s8 + $0x68] ss:$16 sps:$4 sm:$0xff]   ;;  %v952_v11 = vsel %vm733_vm1, 1.0, %v1115_v5  ;;  %vm734_vm2 = vcmp.lt.s32.totalorder %v726_v10, 128  ;;  %vm735_vm3 = vcmp.lt.s32.totalorder %v727_v12, 128  ;;  %v720_v35 = vadd.s32 40, %v1273_v49 }
  0x17   : > { %s900_s25 = sshll.u32 %s1345_s16, 3 }
  0x18   : > { %971 = vmatpush3.bf16.msra.mxu0 %v1069_v18  ;;  %v719_v18 = vadd.s32 32, %v1273_v49  ;;  %s214_s24 = scalar_lea.vmem %s1341_s4, %s900_s25 }
  0x19   : > { %1011 = vmatpush3.bf16.msra.mxu1 %v1070_v19  ;;  %972 = vmatprep.subr.bf16.mxu0 %v1071_v20 }
  0x1a   : > { %1012 = vmatprep.subr.bf16.mxu1 %v1072_v21 }
  0x1c   : > { %973 = vmatpush3.bf16.msra.mxu0 %v1073_v22 }
  0x1d   : > { %1013 = vmatpush3.bf16.msra.mxu1 %v1074_v23  ;;  %974 = vmatprep.subr.bf16.mxu0 %v1075_v24 }
  0x1e   : > { %1014 = vmatprep.subr.bf16.mxu1 %v1076_v25 }
  0x20   : > { %975 = vmatpush3.bf16.msra.mxu0 %v1077_v26 }
  0x21   : > { %1015 = vmatpush3.bf16.msra.mxu1 %v1078_v27  ;;  %976 = vmatprep.subr.bf16.mxu0 %v1079_v28 }
  0x22   : > { %1016 = vmatprep.subr.bf16.mxu1 %v1080_v29 }
  0x24   : > { %977 = vmatpush3.bf16.msra.mxu0 %v1081_v30 }
  0x25   : > { %1017 = vmatpush3.bf16.msra.mxu1 %v1082_v31 }
  0x27   : > { %608 = vmatmul.mubr.bf16.vlgmr.msra.gmra.mrb[0].mxu0 %v1083_v32  ;;  %v953_v32 = vsel %vm734_vm2, 1.0, %v1115_v5 }
  0x28   : > { %673 = vmatmul.mubr.bf16.vlgmr.msra.gmra.mrb[0].mxu1 %v1086_v34  ;;  %615 = vmatprep.mubr.bf16.mxu0 %v1089_v36  ;;  %v728_v34 = vadd.s32 %v1275_v50, %v719_v18 }
  0x29   : > { %680 = vmatprep.mubr.bf16.mxu1 %v1091_v37 }
  0x2a   : > { %vm736_vm4 = vcmp.lt.s32.totalorder %v728_v34, 128 }
  0x2b   : > { %v955_v1 = vsel %vm736_vm4, 1.0, %v1115_v5 }
  0x2f   : > { %616 = vmatmul.mubr.bf16.gmra.mrb[4].mxu0 %v1093_v38 }
  0x30   : > { %681 = vmatmul.mubr.bf16.gmra.mrb[4].mxu1 %v1094_v39  ;;  %623 = vmatprep.mubr.bf16.mxu0 %v1095_v40  ;;  %v954_v39 = vsel %vm735_vm3, 1.0, %v1115_v5 }
  0x31   : > { %688 = vmatprep.mubr.bf16.mxu1 %v1097_v41 }
  0x37   : > { %624 = vmatmul.mubr.bf16.gmra.mrb[8].mxu0 %v1099_v42 }
  0x38   : > { %689 = vmatmul.mubr.bf16.gmra.mrb[8].mxu1 %v1100_v43  ;;  %631 = vmatprep.mubr.bf16.mxu0 %v1101_v44 }
  0x39   : > { %696 = vmatprep.mubr.bf16.mxu1 %v1103_v45  ;;  %v729_v45 = vadd.s32 %v1275_v50, %v720_v35 }
  0x3b   : > { %vm737_vm5 = vcmp.lt.s32.totalorder %v729_v45, 128 }
  0x3f   : > { %632 = vmatmul.mubr.bf16.gmra.mrb[12].mxu0 %v1105_v46  ;;  %v721_v46 = vadd.s32 48, %v1273_v49 }
  0x40   : > { %697 = vmatmul.mubr.bf16.gmra.mrb[12].mxu1 %v1106_v47 }
  0xfa   : > { %v978_v53 = vpop.f32.mrb[0].mxu0 }
  0xfb   : > { %v1018_v55 = vpop.f32.mrb[0].mxu1  ;;  %v979_v57 = vpop.f32.mrb[1].mxu0 }
  0xfc   : > { %v980_v58 = vadd.f32 %v979_v57, %v978_v53  ;;  %v1019_v59 = vpop.f32.mrb[1].mxu1  ;;  %v981_v60 = vpop.f32.mrb[2].mxu0 }
  0xfd   : > { %v1020_v62 = vadd.f32 %v1019_v59, %v1018_v55  ;;  %v1021_v63 = vpop.f32.mrb[2].mxu1  ;;  %v982_v0 = vpop.f32.mrb[3].mxu0  ;;  %v722_v59 = vadd.s32 56, %v1273_v49 }
  0xfe   : > { %v610_v2 = vadd.f32 %v980_v58, %v1284_v56  ;;  %v983_v3 = vadd.f32 %v982_v0, %v981_v60  ;;  %v1022_v4 = vpop.f32.mrb[3].mxu1 }
  0xff   : > { %v1023_v7 = vadd.f32 %v1022_v4, %v1021_v63 }
 0x100   : > { %v675_v8 = vadd.f32 %v1020_v62, %v610_v2  ;;  %v613_v9 = vadd.f32 %v983_v3, %v1284_v56 }
 0x102   : > { %705 = vst [vmem:[%s1293_s21] sm:$0xff] %v675_v8  ;;  %v756_v13 = vmul.f32 %v951_v6, %v675_v8  ;;  %v678_v14 = vadd.f32 %v1023_v7, %v613_v9  ;;  %v984_v15 = vpop.f32.mrb[4].mxu0  ;;  %v730_v7 = vadd.s32 %v1275_v50, %v721_v46  ;;  %v956_v9 = vsel %vm737_vm5, 1.0, %v1115_v5 }
 0x103   : > { %v1024_v16 = vpop.f32.mrb[4].mxu1  ;;  %v985_v17 = vpop.f32.mrb[5].mxu0 }
 0x104   : > { %706 = vst [vmem:[%s1293_s21 + $0x8] sm:$0xff] %v678_v14  ;;  %v757_v19 = vmul.f32 %v952_v11, %v678_v14  ;;  %v986_v20 = vadd.f32 %v985_v17, %v984_v15  ;;  %v1025_v21 = vpop.f32.mrb[5].mxu1  ;;  %v987_v22 = vpop.f32.mrb[6].mxu0  ;;  %v777_v23 = vmul.f32 %v756_v13, %v675_v8  ;;  %v731_v11 = vadd.s32 %v1275_v50, %v722_v59 }
 0x105   : > { %v1026_v24 = vadd.f32 %v1025_v21, %v1024_v16  ;;  %v1027_v25 = vpop.f32.mrb[6].mxu1  ;;  %v988_v26 = vpop.f32.mrb[7].mxu0  ;;  %vm738_vm6 = vcmp.lt.s32.totalorder %v730_v7, 128 }
 0x106   : > { %v764_v27 = vadd.f32 %v757_v19, %v756_v13  ;;  %v778_v28 = vmul.f32 %v757_v19, %v678_v14  ;;  %v618_v29 = vadd.f32 %v986_v20, %v1284_v56  ;;  %v989_v30 = vadd.f32 %v988_v26, %v987_v22  ;;  %v1028_v31 = vpop.f32.mrb[7].mxu1 }
 0x107   : > { %v1029_v33 = vadd.f32 %v1028_v31, %v1027_v25  ;;  %vm739_vm7 = vcmp.lt.s32.totalorder %v731_v11, 128 }
 0x108   : > { %v785_v36 = vadd.f32 %v778_v28, %v777_v23  ;;  %v683_v37 = vadd.f32 %v1026_v24, %v618_v29  ;;  %v621_v38 = vadd.f32 %v989_v30, %v1284_v56  ;;  %v957_v29 = vsel %vm738_vm6, 1.0, %v1115_v5 }
 0x109   : > { %v958_v34 = vsel %vm739_vm7, 1.0, %v1115_v5 }
 0x10a   : > { %707 = vst [vmem:[%s1293_s21 + $0x10] sm:$0xff] %v683_v37  ;;  %v758_v40 = vmul.f32 %v953_v32, %v683_v37  ;;  %v686_v41 = vadd.f32 %v1029_v33, %v621_v38  ;;  %v990_v42 = vpop.f32.mrb[8].mxu0 }
 0x10b   : > { %v1030_v43 = vpop.f32.mrb[8].mxu1  ;;  %v991_v44 = vpop.f32.mrb[9].mxu0 }
 0x10c   : > { %v765_v47 = vadd.f32 %v764_v27, %v758_v40  ;;  %v779_v48 = vmul.f32 %v758_v40, %v683_v37  ;;  %708 = vst [vmem:[%s1293_s21 + $0x18] sm:$0xff] %v686_v41  ;;  %v759_v51 = vmul.f32 %v954_v39, %v686_v41  ;;  %v992_v52 = vadd.f32 %v991_v44, %v990_v42  ;;  %v1031_v53 = vpop.f32.mrb[9].mxu1  ;;  %v993_v54 = vpop.f32.mrb[10].mxu0 }
 0x10d   : > { %v1032_v55 = vadd.f32 %v1031_v53, %v1030_v43  ;;  %v1033_v57 = vpop.f32.mrb[10].mxu1  ;;  %v994_v58 = vpop.f32.mrb[11].mxu0 }
 0x10e   : > { %v786_v60 = vadd.f32 %v785_v36, %v779_v48  ;;  %v766_v61 = vadd.f32 %v765_v47, %v759_v51  ;;  %v780_v62 = vmul.f32 %v759_v51, %v686_v41  ;;  %v626_v63 = vadd.f32 %v992_v52, %v1284_v56  ;;  %v1034_v0 = vpop.f32.mrb[11].mxu1 }
 0x10f   : > { %v995_v2 = vadd.f32 %v994_v58, %v993_v54  ;;  %v1035_v3 = vadd.f32 %v1034_v0, %v1033_v57 }
 0x110   : > { %v787_v4 = vadd.f32 %v786_v60, %v780_v62  ;;  %v691_v6 = vadd.f32 %v1032_v55, %v626_v63 }
 0x111   : > { %v629_v8 = vadd.f32 %v995_v2, %v1284_v56 }
 0x112   : > { %709 = vst [vmem:[%s1293_s21 + $0x20] sm:$0xff] %v691_v6  ;;  %v760_v49 = vmul.f32 %v955_v1, %v691_v6  ;;  %v996_v10 = vpop.f32.mrb[12].mxu0 }
 0x113   : > { %v694_v12 = vadd.f32 %v1035_v3, %v629_v8  ;;  %v1036_v13 = vpop.f32.mrb[12].mxu1  ;;  %v997_v14 = vpop.f32.mrb[13].mxu0 }
 0x114   : > { %v767_v15 = vadd.f32 %v766_v61, %v760_v49  ;;  %v781_v16 = vmul.f32 %v760_v49, %v691_v6  ;;  %v998_v17 = vadd.f32 %v997_v14, %v996_v10  ;;  %v1037_v18 = vpop.f32.mrb[13].mxu1  ;;  %v999_v19 = vpop.f32.mrb[14].mxu0 }
 0x115   : > { %710 = vst [vmem:[%s1293_s21 + $0x28] sm:$0xff] %v694_v12  ;;  %v761_v20 = vmul.f32 %v956_v9, %v694_v12  ;;  %v1038_v21 = vadd.f32 %v1037_v18, %v1036_v13  ;;  %v1039_v22 = vpop.f32.mrb[14].mxu1  ;;  %v1000_v23 = vpop.f32.mrb[15].mxu0 }
 0x116   : > { %v788_v24 = vadd.f32 %v787_v4, %v781_v16  ;;  %v634_v25 = vadd.f32 %v998_v17, %v1284_v56  ;;  %v1001_v26 = vadd.f32 %v1000_v23, %v999_v19  ;;  %v1040_v50 = vpop.f32.mrb[15].mxu1 }
 0x117   : > { %v768_v27 = vadd.f32 %v767_v15, %v761_v20  ;;  %v782_v28 = vmul.f32 %v761_v20, %v694_v12  ;;  %v1041_v30 = vadd.f32 %v1040_v50, %v1039_v22 }
 0x118   : > { %v699_v31 = vadd.f32 %v1038_v21, %v634_v25  ;;  %v637_v32 = vadd.f32 %v1001_v26, %v1284_v56 }
 0x119   : > { %v789_v33 = vadd.f32 %v788_v24, %v782_v28 }
 0x11a   : > { %711 = vst [vmem:[%s1293_s21 + $0x30] sm:$0xff] %v699_v31  ;;  %v762_v35 = vmul.f32 %v957_v29, %v699_v31  ;;  %v702_v36 = vadd.f32 %v1041_v30, %v637_v32 }
 0x11c   : > { %v769_v37 = vadd.f32 %v768_v27, %v762_v35  ;;  %v783_v38 = vmul.f32 %v762_v35, %v699_v31  ;;  %712 = vst [vmem:[%s1293_s21 + $0x38] sm:$0xff] %v702_v36  ;;  %v763_v39 = vmul.f32 %v958_v34, %v702_v36 }
 0x11e   : > { %v790_v40 = vadd.f32 %v789_v33, %v783_v38  ;;  %v770_v41 = vadd.f32 %v769_v37, %v763_v39  ;;  %v784_v42 = vmul.f32 %v763_v39, %v702_v36 }
 0x120   : > { %v771_v43 = vrot.slane %v770_v41, 4  ;;  %v791_v44 = vadd.f32 %v790_v40, %v784_v42 }
 0x122   : > { %v772_v45 = vadd.f32 %v771_v43, %v770_v41  ;;  %v792_v46 = vrot.slane %v791_v44, 4 }
 0x124   : > { %v773_v56 = vrot.slane %v772_v45, 2  ;;  %v793_v47 = vadd.f32 %v792_v46, %v791_v44 }
 0x126   : > { %v774_v5 = vadd.f32 %v773_v56, %v772_v45  ;;  %v794_v48 = vrot.slane %v793_v47, 2 }
 0x128   : > { %v775_v51 = vrot.slane %v774_v5, 1  ;;  %v795_v52 = vadd.f32 %v794_v48, %v793_v47 }
 0x12a   : > { %v796_v53 = vrot.slane %v795_v52, 1  ;;  %v776_v54 = vadd.f32 %v775_v51, %v774_v5 }
 0x12c   : > { %v797_v55 = vadd.f32 %v796_v53, %v795_v52 }
 0x12e   : > { %v799_v57 = vsel %vm798_vm8, %v776_v54, %v797_v55 }
 0x12f   : > { %v801_v58 = vsel %vm800_vm9, %v799_v57, 0.0 }
 0x130   : > { %802 = vst [vmem:[%s214_s24] sm:$0xff] %v801_v58 }
 0x131 PF: > { %s15_s15 = sadd.s32 1, %s1113_s15  }
 0x132   : > { %p12_p5 = scmp.ge.s32.totalorder %s15_s15, 4  }
 0x134   :  { %14 = sbr.rel (!%p12_p5) target bundleno = 1 (0x1), region = 74 }

// kernel: cpatch_discriminator.6
= control target key start
LH: loop header
LB: loop body
LE: loop exit
PB: predicated region body
PF: predicated region fallthrough
CT: control target
= control target key end

     0   :  { %s420_s12 = smov 0   ;;  %s447_s0 = inlined_call_operand.vmem [shape: f32[128,128], index: 0, kind: input, shape index: {}]   ;;  %s448_s1 = inlined_call_operand.vmem [shape: f32[1,128], index: 1, kind: input, shape index: {}]   ;;  %s449_s2 = inlined_call_operand.vmem [shape: f32[1,128], index: 2, kind: input, shape index: {}]   ;;  %s450_s3 = inlined_call_operand.vmem [shape: bf16[128,128], index: 3, kind: output, shape index: {}]  }
   0x1 LB: > { %s332_s13 = sadd.s32 4294967295, %s398_s12   ;;  %p336_p0 = scmp.ge.s32.totalorder %s398_s12, 1  ;;  %s398_s12 = sphi %s420_s12, %s13_s12  }
   0x2   : > { %p138_p1 = scmp.lt.s32.totalorder %s398_s12, 3 }
   0x4   : > { %p139_p2 = pnand %p336_p0, %p138_p1 }
   0x5   : > { %s337_s14 = sshll.u32 (!%p139_p2), %s332_s13, 3  ;;  %v341_v0 = vld [vmem:[%s448_s1] ss:$0 sm:$0xff] (!%p139_p2) }
   0x6   : > { %142 = sbr.rel (%p139_p2) target bundleno = 34 (0x22), region = 32  ;;  %p163_p3 = scmp.lt.s32.totalorder (!%p139_p2), %s337_s14, 15  ;;  %v342_v1 = vld [vmem:[%s449_s2] ss:$0 sm:$0xff] (!%p139_p2) }
   0xd   : > { %s452_s14 = smov (!%p163_p3, %s337_s14), 15 }
   0xe   : > { %s338_s15 = sshll.u32 %s452_s14, 3  ;;  %s340_s23 = sshll.u32 %s452_s14, 2 }
   0xf   : > { %s166_s20 = scalar_lea.vmem %s447_s0, %s338_s15  ;;  %s172_s26 = scalar_lea.vmem %s450_s3, %s340_s23 }
  0x10   : > { %v174_v2 = vld [vmem:[%s166_s20] sm:$0xff]  ;;  %v175_v3 = vld [vmem:[%s166_s20 + $0x8] sm:$0xff]  ;;  %v176_v4 = vld [vmem:[%s166_s20 + $0x10] sm:$0xff] }
  0x11   : > { %v189_v5 = vmul.f32 %v341_v0, %v174_v2  ;;  %v190_v6 = vmul.f32 %v341_v0, %v175_v3  ;;  %v177_v7 = vld [vmem:[%s166_s20 + $0x18] sm:$0xff]  ;;  %v191_v8 = vmul.f32 %v341_v0, %v176_v4  ;;  %v178_v9 = vld [vmem:[%s166_s20 + $0x20] sm:$0xff]  ;;  %v179_v10 = vld [vmem:[%s166_s20 + $0x28] sm:$0xff] }
  0x12   : > { %v192_v11 = vmul.f32 %v341_v0, %v177_v7  ;;  %v193_v12 = vmul.f32 %v341_v0, %v178_v9  ;;  %v194_v13 = vmul.f32 %v341_v0, %v179_v10  ;;  %v180_v14 = vld [vmem:[%s166_s20 + $0x30] sm:$0xff]  ;;  %v181_v15 = vld [vmem:[%s166_s20 + $0x38] sm:$0xff] }
  0x13   : > { %v204_v16 = vadd.f32 %v342_v1, %v189_v5  ;;  %v205_v17 = vadd.f32 %v342_v1, %v190_v6  ;;  %v206_v18 = vadd.f32 %v342_v1, %v191_v8  ;;  %v195_v19 = vmul.f32 %v341_v0, %v180_v14 }
  0x14   : > { %v207_v20 = vadd.f32 %v342_v1, %v192_v11  ;;  %v208_v21 = vadd.f32 %v342_v1, %v193_v12  ;;  %v209_v22 = vadd.f32 %v342_v1, %v194_v13  ;;  %v196_v23 = vmul.f32 %v341_v0, %v181_v15 }
  0x15   : > { %vm212_vm0 = vcmp.ge.f32.partialorder %v204_v16, 0.0  ;;  %vm213_vm1 = vcmp.ge.f32.partialorder %v205_v17, 0.0  ;;  %v220_v24 = vmul.f32 0.2, %v204_v16  ;;  %v221_v25 = vmul.f32 0.2, %v205_v17 }
  0x16   : > { %vm214_vm2 = vcmp.ge.f32.partialorder %v206_v18, 0.0  ;;  %vm215_vm3 = vcmp.ge.f32.partialorder %v207_v20, 0.0  ;;  %v222_v26 = vmul.f32 0.2, %v206_v18  ;;  %v223_v27 = vmul.f32 0.2, %v207_v20 }
  0x17   : > { %v228_v28 = vsel %vm212_vm0, %v204_v16, %v220_v24  ;;  %v229_v29 = vsel %vm213_vm1, %v205_v17, %v221_v25  ;;  %vm216_vm4 = vcmp.ge.f32.partialorder %v208_v21, 0.0  ;;  %vm217_vm5 = vcmp.ge.f32.partialorder %v209_v22, 0.0 }
  0x18   : > { %v364_v30 = vpack.c.bf16 %v229_v29, %v228_v28  ;;  %v230_v31 = vsel %vm214_vm2, %v206_v18, %v222_v26  ;;  %v231_v32 = vsel %vm215_vm3, %v207_v20, %v223_v27  ;;  %v224_v33 = vmul.f32 0.2, %v208_v21 }
  0x19   : > { %v369_v34 = vpack.c.bf16 %v231_v32, %v230_v31  ;;  %v225_v35 = vmul.f32 0.2, %v209_v22  ;;  %v210_v36 = vadd.f32 %v342_v1, %v195_v19  ;;  %v211_v37 = vadd.f32 %v342_v1, %v196_v23 }
  0x1a   : > { %365 = vst [vmem:[%s172_s26] sm:$0xff] %v364_v30   ;;  %v232_v38 = vsel %vm216_vm4, %v208_v21, %v224_v33 }
  0x1b   : > { %381 = vst [vmem:[%s172_s26 + $0x8] sm:$0xff] %v369_v34   ;;  %v233_v39 = vsel %vm217_vm5, %v209_v22, %v225_v35  ;;  %vm218_vm6 = vcmp.ge.f32.partialorder %v210_v36, 0.0  ;;  %vm219_vm7 = vcmp.ge.f32.partialorder %v211_v37, 0.0  ;;  %v226_v40 = vmul.f32 0.2, %v210_v36 }
  0x1c   : > { %v374_v41 = vpack.c.bf16 %v233_v39, %v232_v38  ;;  %v227_v42 = vmul.f32 0.2, %v211_v37 }
  0x1d   : > { %v234_v43 = vsel %vm218_vm6, %v210_v36, %v226_v40 }
  0x1e   : > { %382 = vst [vmem:[%s172_s26 + $0x10] sm:$0xff] %v374_v41   ;;  %v235_v44 = vsel %vm219_vm7, %v211_v37, %v227_v42 }
  0x1f   : > { %v379_v45 = vpack.c.bf16 %v235_v44, %v234_v43 }
  0x21   : > { %383 = vst [vmem:[%s172_s26 + $0x18] sm:$0xff] %v379_v45  }
  0x22 PF: > { %s13_s12 = sadd.s32 1, %s398_s12  }
  0x23   : > { %p10_p4 = scmp.ge.s32.totalorder %s13_s12, 4  }
  0x25   :  { %12 = sbr.rel (!%p10_p4) target bundleno = 1 (0x1), region = 62 }

// kernel: cpatch_discriminator.7
= control target key start
LH: loop header
LB: loop body
LE: loop exit
PB: predicated region body
PF: predicated region fallthrough
CT: control target
= control target key end

     0   :  { %s1357_s12 = smov 0   ;;  %s1359_s13 = smov 0   ;;  %s1600_s0 = inlined_call_operand.vmem [shape: bf16[32,1024], index: 0, kind: input, shape index: {}]   ;;  %s1601_s1 = inlined_call_operand.vmem [shape: bf16[1024,128], index: 1, kind: input, shape index: {}]   ;;  %s1602_s2 = inlined_call_operand.vmem [shape: f32[1,128], index: 2, kind: input, shape index: {}]   ;;  %s1603_s3 = inlined_call_operand.vmem [shape: f32[2,8,128], index: 3, kind: output, shape index: {}]  }
   0x1   :  { %s1361_s14 = smov 0  }
   0x2 LB: > { %s25_s15 = sadd.s32 1, %s1330_s13  ;;  %p1044_p0 = scmp.ge.s32.totalorder %s1334_s14, 1  ;;  %s1334_s14 = sphi %s1361_s14, %s13_s14   ;;  %s1330_s13 = sphi %s1359_s13, %s1605_s13   ;;  %s1326_s12 = sphi %s1357_s12, %s1604_s12  }
   0x3   : > { %p27_p1 = scmp.ge.s32.totalorder %s25_s15, 2  ;;  %p155_p2 = scmp.lt.s32.totalorder %s1334_s14, 3 }
   0x5   : > { %s1607_s15 = smov (%p27_p1, %s25_s15), 0  ;;  %p156_p3 = pnand %p1044_p0, %p155_p2 }
   0x6   : > { %v1240_v0 = vld [vmem:[%s1601_s1 + $0x40] sm:$0xff] (!%p156_p3)   ;;  %v1244_v4 = vld [vmem:[%s1601_s1 + $0x48] sm:$0xff] (!%p156_p3)   ;;  %v1248_v8 = vld [vmem:[%s1601_s1 + $0x50] sm:$0xff] (!%p156_p3)   ;;  %s1045_s25 = sshll.u32 (!%p156_p3), %s1326_s12, 1  ;;  %p189_p5 = scmp.lt.s32.totalorder (!%p156_p3), %s1326_s12, 1 }
   0x7   : > { %159 = sbr.rel (%p156_p3) target bundleno = 348 (0x15c), region = 32  ;;  %v1241_v1 = vld [vmem:[%s1601_s1 + $0xc0] sm:$0xff] (!%p156_p3)   ;;  %1127 = vmatprep.subr.bf16.mxu0 (!%p156_p3), %v1240_v0  ;;  %v1245_v5 = vld [vmem:[%s1601_s1 + $0xc8] sm:$0xff] (!%p156_p3)   ;;  %v1249_v9 = vld [vmem:[%s1601_s1 + $0xd0] sm:$0xff] (!%p156_p3)   ;;  %p182_p4 = scmp.lt.s32.totalorder (!%p156_p3), %s1045_s25, 3 }
   0x8   : > { %v1242_v2 = vld [vmem:[%s1601_s1] sm:$0xff] (!%p156_p3)   ;;  %1149 = vmatprep.subr.bf16.mxu1 (!%p156_p3), %v1241_v1  ;;  %v1246_v6 = vld [vmem:[%s1601_s1 + $0x8] sm:$0xff] (!%p156_p3)   ;;  %v1250_v10 = vld [vmem:[%s1601_s1 + $0x10] sm:$0xff] (!%p156_p3)  }
   0x9   : > { %v1243_v3 = vld [vmem:[%s1601_s1 + $0x80] sm:$0xff] (!%p156_p3)   ;;  %1128 = vmatpush3.bf16.msra.mxu0 (!%p156_p3), %v1242_v2  ;;  %v1247_v7 = vld [vmem:[%s1601_s1 + $0x88] sm:$0xff] (!%p156_p3)   ;;  %v1251_v11 = vld [vmem:[%s1601_s1 + $0x90] sm:$0xff] (!%p156_p3)  }
   0xa   : > { %1150 = vmatpush3.bf16.msra.mxu1 (!%p156_p3), %v1243_v3  ;;  %1129 = vmatprep.subr.bf16.mxu0 (!%p156_p3), %v1244_v4  ;;  %v1252_v12 = vld [vmem:[%s1601_s1 + $0x58] sm:$0xff] (!%p156_p3)   ;;  %v1256_v16 = vld [vmem:[%s1601_s1 + $0x60] sm:$0xff] (!%p156_p3)   ;;  %v1260_v20 = vld [vmem:[%s1601_s1 + $0x68] sm:$0xff] (!%p156_p3)  }
   0xb   : > { %1151 = vmatprep.subr.bf16.mxu1 (!%p156_p3), %v1245_v5  ;;  %v1253_v13 = vld [vmem:[%s1601_s1 + $0xd8] sm:$0xff] (!%p156_p3)   ;;  %v1257_v17 = vld [vmem:[%s1601_s1 + $0xe0] sm:$0xff] (!%p156_p3)   ;;  %v1261_v21 = vld [vmem:[%s1601_s1 + $0xe8] sm:$0xff] (!%p156_p3)  }
   0xc   : > { %v1254_v14 = vld [vmem:[%s1601_s1 + $0x18] sm:$0xff] (!%p156_p3)   ;;  %v1258_v18 = vld [vmem:[%s1601_s1 + $0x20] sm:$0xff] (!%p156_p3)   ;;  %v1262_v22 = vld [vmem:[%s1601_s1 + $0x28] sm:$0xff] (!%p156_p3)  }
   0xd   : > { %1130 = vmatpush3.bf16.msra.mxu0 (!%p156_p3), %v1246_v6  ;;  %v1255_v15 = vld [vmem:[%s1601_s1 + $0x98] sm:$0xff] (!%p156_p3)   ;;  %v1259_v19 = vld [vmem:[%s1601_s1 + $0xa0] sm:$0xff] (!%p156_p3)   ;;  %v1263_v23 = vld [vmem:[%s1601_s1 + $0xa8] sm:$0xff] (!%p156_p3)  }
   0xe   : > { %1152 = vmatpush3.bf16.msra.mxu1 %v1247_v7  ;;  %1131 = vmatprep.subr.bf16.mxu0 %v1248_v8  ;;  %s1609_s25 = smov (!%p182_p4, %s1045_s25), 3  ;;  %v1264_v24 = vld [vmem:[%s1601_s1 + $0x70] sm:$0xff]   ;;  %v1268_v28 = vld [vmem:[%s1601_s1 + $0x78] sm:$0xff]   ;;  %v1272_v40 = vld [vmem:[%s1601_s1 + $0x140] sm:$0xff]   ;;  %s1611_s12 = smov (!%p189_p5, %s1326_s12), 1 }
   0xf   : > { %1153 = vmatprep.subr.bf16.mxu1 %v1249_v9  ;;  %v1265_v25 = vld [vmem:[%s1601_s1 + $0xf0] sm:$0xff]   ;;  %s1126_s26 = sshll.u32 %s1609_s25, 5  ;;  %v1269_v29 = vld [vmem:[%s1601_s1 + $0xf8] sm:$0xff]   ;;  %v1273_v41 = vld [vmem:[%s1601_s1 + $0x1c0] sm:$0xff]  }
  0x10   : > { %v1266_v26 = vld [vmem:[%s1601_s1 + $0x30] sm:$0xff]   ;;  %s1471_s8 = scalar_lea.vmem %s1600_s0, %s1126_s26  ;;  %v1270_v30 = vld [vmem:[%s1601_s1 + $0x38] sm:$0xff]   ;;  %v1274_v42 = vld [vmem:[%s1601_s1 + $0x100] sm:$0xff]  }
  0x11   : > { %1132 = vmatpush3.bf16.msra.mxu0 %v1250_v10  ;;  %v1267_v27 = vld [vmem:[%s1601_s1 + $0xb0] sm:$0xff]   ;;  %v1271_v31 = vld [vmem:[%s1601_s1 + $0xb8] sm:$0xff]   ;;  %v199_v32 = vld [vmem:[%s1471_s8] sm:$0xff] }
  0x12   : > { %1154 = vmatpush3.bf16.msra.mxu1 %v1251_v11  ;;  %1133 = vmatprep.subr.bf16.mxu0 %v1252_v12  ;;  %v203_v33 = vld [vmem:[%s1471_s8 + $0x20] sm:$0xff]  ;;  %v200_v34 = vld [vmem:[%s1471_s8 + $0x8] sm:$0xff]  ;;  %v1280_v48 = vld [vmem:[%s1601_s1 + $0x150] sm:$0xff]  }
  0x13   : > { %1155 = vmatprep.subr.bf16.mxu1 %v1253_v13  ;;  %v1050_v35 = vcombine.low %v199_v32, %v203_v33  ;;  %v1051_v36 = vcombine.high %v199_v32, %v203_v33  ;;  %v204_v37 = vld [vmem:[%s1471_s8 + $0x28] sm:$0xff]  ;;  %v1275_v43 = vld [vmem:[%s1601_s1 + $0x180] sm:$0xff]   ;;  %v1281_v49 = vld [vmem:[%s1601_s1 + $0x1d0] sm:$0xff]  }
  0x14   : > { %v1052_v38 = vcombine.low %v200_v34, %v204_v37  ;;  %v1053_v39 = vcombine.high %v200_v34, %v204_v37  ;;  %v1276_v44 = vld [vmem:[%s1601_s1 + $0x148] sm:$0xff]   ;;  %v1282_v50 = vld [vmem:[%s1601_s1 + $0x110] sm:$0xff]   ;;  %v1284_v52 = vld [vmem:[%s1601_s1 + $0x158] sm:$0xff]  }
  0x15   : > { %1134 = vmatpush3.bf16.msra.mxu0 %v1254_v14  ;;  %798 = vmatprep.mubr.bf16.mxu0 %v1051_v36  ;;  %v1277_v45 = vld [vmem:[%s1601_s1 + $0x1c8] sm:$0xff]   ;;  %v1283_v51 = vld [vmem:[%s1601_s1 + $0x190] sm:$0xff]   ;;  %v1285_v53 = vld [vmem:[%s1601_s1 + $0x1d8] sm:$0xff]  }
  0x16   : > { %1156 = vmatpush3.bf16.msra.mxu1 %v1255_v15  ;;  %1135 = vmatprep.subr.bf16.mxu0 %v1256_v16  ;;  %v1278_v46 = vld [vmem:[%s1601_s1 + $0x108] sm:$0xff]   ;;  %v1286_v54 = vld [vmem:[%s1601_s1 + $0x118] sm:$0xff]   ;;  %v1288_v56 = vld [vmem:[%s1601_s1 + $0x160] sm:$0xff]   ;;  %v1336_v16 = vmov 0.0  }
  0x17   : > { %1157 = vmatprep.subr.bf16.mxu1 %v1257_v17  ;;  %839 = vmatprep.mubr.bf16.mxu1 %v1053_v39  ;;  %v1279_v47 = vld [vmem:[%s1601_s1 + $0x188] sm:$0xff]   ;;  %v1287_v55 = vld [vmem:[%s1601_s1 + $0x198] sm:$0xff]   ;;  %v1289_v57 = vld [vmem:[%s1601_s1 + $0x1e0] sm:$0xff]   ;;  %198 = vst [vmem:[#allocation2] sm:$0x1] %v1336_v16 }
  0x18   : > { %v1290_v58 = vld [vmem:[%s1601_s1 + $0x120] sm:$0xff]   ;;  %v1292_v60 = vld [vmem:[%s1601_s1 + $0x168] sm:$0xff]   ;;  %v1296_v0 = vld [vmem:[%s1601_s1 + $0x170] sm:$0xff]  }
  0x19   : > { %1136 = vmatpush3.bf16.msra.mxu0 %v1258_v18  ;;  %v1291_v59 = vld [vmem:[%s1601_s1 + $0x1a0] sm:$0xff]   ;;  %v1293_v61 = vld [vmem:[%s1601_s1 + $0x1e8] sm:$0xff]   ;;  %v1297_v1 = vld [vmem:[%s1601_s1 + $0x1f0] sm:$0xff]  }
  0x1a   : > { %1158 = vmatpush3.bf16.msra.mxu1 %v1259_v19  ;;  %1137 = vmatprep.subr.bf16.mxu0 %v1260_v20  ;;  %v1294_v62 = vld [vmem:[%s1601_s1 + $0x128] sm:$0xff]   ;;  %v1298_v2 = vld [vmem:[%s1601_s1 + $0x130] sm:$0xff]   ;;  %v1300_v4 = vld [vmem:[%s1601_s1 + $0x178] sm:$0xff]  }
  0x1b   : > { %1159 = vmatprep.subr.bf16.mxu1 %v1261_v21  ;;  %v1295_v63 = vld [vmem:[%s1601_s1 + $0x1a8] sm:$0xff]   ;;  %v1299_v3 = vld [vmem:[%s1601_s1 + $0x1b0] sm:$0xff]   ;;  %v1301_v5 = vld [vmem:[%s1601_s1 + $0x1f8] sm:$0xff]  }
  0x1c   : > { %v1302_v6 = vld [vmem:[%s1601_s1 + $0x138] sm:$0xff]   ;;  %v201_v8 = vld [vmem:[%s1471_s8 + $0x10] sm:$0xff]  ;;  %v1049_v19 = vld [vmem:[%s1602_s2] ss:$0 sm:$0xff] }
  0x1d   : > { %1138 = vmatpush3.bf16.msra.mxu0 %v1262_v22  ;;  %v1303_v7 = vld [vmem:[%s1601_s1 + $0x1b8] sm:$0xff]   ;;  %v205_v9 = vld [vmem:[%s1471_s8 + $0x30] sm:$0xff] }
  0x1e   : > { %1160 = vmatpush3.bf16.msra.mxu1 %v1263_v23  ;;  %1139 = vmatprep.subr.bf16.mxu0 %v1264_v24  ;;  %v1054_v10 = vcombine.low %v201_v8, %v205_v9  ;;  %v1055_v11 = vcombine.high %v201_v8, %v205_v9  ;;  %v202_v12 = vld [vmem:[%s1471_s8 + $0x18] sm:$0xff] }
  0x1f   : > { %1161 = vmatprep.subr.bf16.mxu1 %v1265_v25  ;;  %v206_v13 = vld [vmem:[%s1471_s8 + $0x38] sm:$0xff]  ;;  %s1048_s8 = sshll.u32 %s1611_s12, 3 }
  0x20   : > { %v1056_v14 = vcombine.low %v202_v12, %v206_v13  ;;  %v1057_v15 = vcombine.high %v202_v12, %v206_v13  ;;  %s192_s18 = scalar_lea.vmem %s1603_s3, %s1048_s8 }
  0x21   : > { %1140 = vmatpush3.bf16.msra.mxu0 %v1266_v26 }
  0x22   : > { %1162 = vmatpush3.bf16.msra.mxu1 %v1267_v27  ;;  %1141 = vmatprep.subr.bf16.mxu0 %v1268_v28 }
  0x23   : > { %1163 = vmatprep.subr.bf16.mxu1 %v1269_v29 }
  0x25   : > { %1142 = vmatpush3.bf16.msra.mxu0 %v1270_v30 }
  0x26   : > { %1164 = vmatpush3.bf16.msra.mxu1 %v1271_v31  ;;  %1171 = vmatprep.subr.bf16.mxu0 %v1272_v40 }
  0x27   : > { %1193 = vmatprep.subr.bf16.mxu1 %v1273_v41 }
  0x28   : > { %799 = vmatmul.mubr.bf16.vlgmr.msra.gmra.mrb[0].mxu0 %v1050_v35 }
  0x29   : > { %840 = vmatmul.mubr.bf16.vlgmr.msra.gmra.mrb[0].mxu1 %v1052_v38  ;;  %1172 = vmatpush3.bf16.msra.mxu0 %v1274_v42 }
  0x2a   : > { %1194 = vmatpush3.bf16.msra.mxu1 %v1275_v43  ;;  %1173 = vmatprep.subr.bf16.mxu0 %v1276_v44 }
  0x2b   : > { %1195 = vmatprep.subr.bf16.mxu1 %v1277_v45  ;;  %880 = vmatprep.mubr.bf16.mxu0 %v1055_v11 }
  0x2c   : > { %921 = vmatprep.mubr.bf16.mxu1 %v1057_v15 }
  0x2d   : > { %1174 = vmatpush3.bf16.msra.mxu0 %v1278_v46 }
  0x2e   : > { %1196 = vmatpush3.bf16.msra.mxu1 %v1279_v47  ;;  %1175 = vmatprep.subr.bf16.mxu0 %v1280_v48 }
  0x2f   : > { %1197 = vmatprep.subr.bf16.mxu1 %v1281_v49 }
  0x31   : > { %1176 = vmatpush3.bf16.msra.mxu0 %v1282_v50 }
  0x32   : > { %1198 = vmatpush3.bf16.msra.mxu1 %v1283_v51  ;;  %1177 = vmatprep.subr.bf16.mxu0 %v1284_v52 }
  0x33   : > { %1199 = vmatprep.subr.bf16.mxu1 %v1285_v53 }
  0x35   : > { %1178 = vmatpush3.bf16.msra.mxu0 %v1286_v54 }
  0x36   : > { %1200 = vmatpush3.bf16.msra.mxu1 %v1287_v55  ;;  %1179 = vmatprep.subr.bf16.mxu0 %v1288_v56 }
  0x37   : > { %1201 = vmatprep.subr.bf16.mxu1 %v1289_v57 }
  0x39   : > { %1180 = vmatpush3.bf16.msra.mxu0 %v1290_v58 }
  0x3a   : > { %1202 = vmatpush3.bf16.msra.mxu1 %v1291_v59  ;;  %1181 = vmatprep.subr.bf16.mxu0 %v1292_v60 }
  0x3b   : > { %1203 = vmatprep.subr.bf16.mxu1 %v1293_v61 }
  0x3d   : > { %1182 = vmatpush3.bf16.msra.mxu0 %v1294_v62 }
  0x3e   : > { %1204 = vmatpush3.bf16.msra.mxu1 %v1295_v63  ;;  %1183 = vmatprep.subr.bf16.mxu0 %v1296_v0  ;;  %v943_v0 = vld [vmem:[#allocation2] sm:$0x1] }
  0x3f   : > { %1205 = vmatprep.subr.bf16.mxu1 %v1297_v1 }
  0x41   : > { %1184 = vmatpush3.bf16.msra.mxu0 %v1298_v2 }
  0x42   : > { %1206 = vmatpush3.bf16.msra.mxu1 %v1299_v3  ;;  %1185 = vmatprep.subr.bf16.mxu0 %v1300_v4  ;;  %v973_v3 = vlaneseq }
  0x43   : > { %1207 = vmatprep.subr.bf16.mxu1 %v1301_v5 }
  0x44   : > { %v974_v4 = vshrl.u32 %v973_v3, 7 }
  0x45   : > { %1186 = vmatpush3.bf16.msra.mxu0 %v1302_v6 }
  0x46   : > { %1208 = vmatpush3.bf16.msra.mxu1 %v1303_v7  ;;  %v975_v5 = vsub.s32 0, %v974_v4 }
  0x48   : > { %881 = vmatmul.mubr.bf16.vlgmr.msra.gmra.mrb[4].mxu0 %v1054_v10 }
  0x49   : > { %922 = vmatmul.mubr.bf16.vlgmr.msra.gmra.mrb[4].mxu1 %v1056_v14 }
  0xfb   : > { %v1143_v17 = vpop.f32.mrb[0].mxu0 }
  0xfc   : > { %v1165_v18 = vpop.f32.mrb[0].mxu1  ;;  %v1144_v20 = vpop.f32.mrb[1].mxu0 }
  0xfd   : > { %v1145_v21 = vadd.f32 %v1144_v20, %v1143_v17  ;;  %v1166_v22 = vpop.f32.mrb[1].mxu1  ;;  %v1146_v23 = vpop.f32.mrb[2].mxu0 }
  0xfe   : > { %v1167_v24 = vadd.f32 %v1166_v22, %v1165_v18  ;;  %v1168_v25 = vpop.f32.mrb[2].mxu1  ;;  %v1147_v26 = vpop.f32.mrb[3].mxu0 }
  0xff   : > { %v801_v27 = vadd.f32 %v1145_v21, %v1049_v19  ;;  %v1148_v28 = vadd.f32 %v1147_v26, %v1146_v23  ;;  %v1169_v29 = vpop.f32.mrb[3].mxu1 }
 0x100   : > { %v1170_v30 = vadd.f32 %v1169_v29, %v1168_v25 }
 0x101   : > { %v842_v31 = vadd.f32 %v1167_v24, %v801_v27  ;;  %v804_v32 = vadd.f32 %v1148_v28, %v1049_v19 }
 0x103   : > { %v845_v33 = vadd.f32 %v1170_v30, %v804_v32 }
 0x11b   : > { %v1187_v34 = vpop.f32.mrb[4].mxu0 }
 0x11c   : > { %v1209_v35 = vpop.f32.mrb[4].mxu1  ;;  %v1188_v36 = vpop.f32.mrb[5].mxu0 }
 0x11d   : > { %v1189_v37 = vadd.f32 %v1188_v36, %v1187_v34  ;;  %v1210_v38 = vpop.f32.mrb[5].mxu1  ;;  %v1190_v39 = vpop.f32.mrb[6].mxu0 }
 0x11e   : > { %v1211_v40 = vadd.f32 %v1210_v38, %v1209_v35  ;;  %v1212_v41 = vpop.f32.mrb[6].mxu1  ;;  %v1191_v42 = vpop.f32.mrb[7].mxu0 }
 0x11f   : > { %v883_v43 = vadd.f32 %v1189_v37, %v842_v31  ;;  %v1192_v44 = vadd.f32 %v1191_v42, %v1190_v39  ;;  %v1213_v45 = vpop.f32.mrb[7].mxu1 }
 0x120   : > { %v1214_v46 = vadd.f32 %v1213_v45, %v1212_v41 }
 0x121   : > { %v924_v47 = vadd.f32 %v1211_v40, %v883_v43  ;;  %v886_v48 = vadd.f32 %v1192_v44, %v845_v33 }
 0x123   : > { %v1122_v49 = vmul.f32 -1.442695, %v924_v47  ;;  %v927_v50 = vadd.f32 %v1214_v46, %v886_v48 }
 0x125   : > { %1304 = vpow2.f32 %v1122_v49  ;;  %v1123_v51 = vmul.f32 -1.442695, %v927_v50 }
 0x127   : > { %1306 = vpow2.f32 %v1123_v51 }
 0x12f   : > { %v1305_v52 = vpop.eup %1304 }
 0x130   : > { %v950_v53 = vadd.f32 1.0, %v1305_v52 }
 0x131   : > { %v1307_v54 = vpop.eup %1306 }
 0x132   : > { %v951_v55 = vadd.f32 1.0, %v1307_v54  ;;  %1308 = vrcp.f32 %v950_v53 }
 0x134   : > { %1310 = vrcp.f32 %v951_v55 }
 0x13c   : > { %v1309_v56 = vpop.eup %1308 }
 0x13e   : > { %v1311_v57 = vpop.eup %1310 }
 0x13f   : > { %v958_v58 = vadd.f32 %v1311_v57, %v1309_v56 }
 0x141   : > { %v959_v59 = vrot.slane %v958_v58, 4 }
 0x143   : > { %v960_v60 = vadd.f32 %v959_v59, %v958_v58 }
 0x145   : > { %v961_v61 = vrot.slane %v960_v60, 2 }
 0x147   : > { %v962_v62 = vadd.f32 %v961_v61, %v960_v60 }
 0x149   : > { %v963_v63 = vrot.slane %v962_v62, 1 }
 0x14b   : > { %v964_v1 = vadd.f32 %v963_v63, %v962_v62 }
 0x14d   : > { %v965_v2 = vadd.f32 %v964_v1, %v943_v0 }
 0x14f   : > { %966 = vst [vmem:[#allocation2] sm:$0x1] %v965_v2 }
 0x156   : > { %v970_v6 = vld [vmem:[#allocation2] sm:$0x1] }
 0x157   : > { %v971_v7 = vmul.f32 0.0625, %v970_v6 }
 0x159   : > { %v976_v8 = vrot.slane %v971_v7, %v975_v5 }
 0x15b   : > { %978 = vst [vmem:[%s192_s18] sm:$0xff] %v976_v8 }
 0x15c PF: > { %s13_s14 = sadd.s32 1, %s1334_s14   ;;  %s1604_s12 = smov %s1330_s13 }
 0x15d   : > { %p10_p6 = scmp.ge.s32.totalorder %s13_s14, 4   ;;  %s1605_s13 = smov %s1607_s15 }
 0x15f   :  { %12 = sbr.rel (!%p10_p6) target bundleno = 2 (0x2), region = 70 }

</bundles_post_ra>
